<compile_context>
chip_gen: v5e
topology: v5e:2x2
jax: 0.10.0
libtpu: 0.0.40
codegen_flags: <defaults>
</compile_context>

<pallas_src>
import functools

import jax
import jax.numpy as jnp
from jax.experimental import pallas as pl
from jax.experimental.pallas import tpu as pltpu


def _fused_transformer_kernel(
    # inputs
    x_ref,                       # (R, D)   input activation tile (R = batch_block * N)
    g1_ref, b1_ref,              # (1, 1, D)        LayerNorm 1 (f32)
    wqkv_ref,                    # (1, D, 3*inner)  fused QKV weights, Q pre-scaled
    wo_ref,                      # (1, inner, D)    output projection
    g2_ref, b2_ref,              # (1, 1, D)        LayerNorm 2 (f32)
    w1_ref, bb1_ref,             # (1, D, H), (1, 1, H)
    w2_ref, bb2_ref,             # (1, H, D), (1, 1, D)
    # output
    o_ref,                       # (R, D)
    # scratch
    acc_ref,                     # (R, D)     f32 activation carried across layers
    attn_ref,                    # (R, inner) f32 per-head attention outputs
    *,
    heads, dim_head, tokens, batch_block, ffn_block,
):
    layer = pl.program_id(1)
    eps = 1e-5
    inner = heads * dim_head
    mxu_dtype = wqkv_ref.dtype                     # bf16 (or f32 if requested)

    # Layer 0: load the input tile into the resident f32 carry.
    @pl.when(layer == 0)
    def _():
        acc_ref[...] = x_ref[...].astype(jnp.float32)

    x = acc_ref[...]                               # (R, D) f32

    def layer_norm(y, g_ref, b_ref):
        mu = jnp.mean(y, axis=-1, keepdims=True)
        var = jnp.mean((y - mu) ** 2, axis=-1, keepdims=True)
        return (y - mu) * jax.lax.rsqrt(var + eps) * g_ref[0] + b_ref[0]

    # ---- PreNorm 1 + Attention + residual (DropPath = identity) ----
    xn = layer_norm(x, g1_ref, b1_ref)

    # One fused, lane-dense QKV projection (softmax scale already folded into
    # the Q columns at pack time).
    qkv = jnp.dot(xn.astype(mxu_dtype), wqkv_ref[0],
                  preferred_element_type=jnp.float32)          # (R, 3*inner) f32

    # Per-batch, per-head (N, N) attention.  Small (N,dh)/(N,N) matmuls stay in
    # f32; they are tiny relative to the fused projections.
    for b in range(batch_block):
        r0 = b * tokens
        for h in range(heads):
            c0 = h * dim_head
            q = qkv[r0:r0 + tokens, c0:c0 + dim_head]
            k = qkv[r0:r0 + tokens, inner + c0:inner + c0 + dim_head]
            v = qkv[r0:r0 + tokens, 2 * inner + c0:2 * inner + c0 + dim_head]

            dots = jax.lax.dot_general(                        # (N, N) = q @ k.T
                q, k, (((1,), (1,)), ((), ())),
                preferred_element_type=jnp.float32)
            m = jnp.max(dots, axis=-1, keepdims=True)
            p = jnp.exp(dots - m)
            attn = p * pl.reciprocal(jnp.sum(p, axis=-1, keepdims=True),
                                     approx=True)
            ov = jnp.dot(attn, v, preferred_element_type=jnp.float32)  # (N, dh)
            attn_ref[pl.ds(r0, tokens), pl.ds(c0, dim_head)] = ov

    # One fused, lane-dense output projection.
    attn_out = attn_ref[...]                                   # (R, inner) f32
    x1 = x + jnp.dot(attn_out.astype(mxu_dtype), wo_ref[0],
                     preferred_element_type=jnp.float32)       # (R, D)

    # ---- PreNorm 2 + FeedForward (Linear -> exact GELU -> Linear) + residual ----
    xn2 = layer_norm(x1, g2_ref, b2_ref).astype(mxu_dtype)
    hidden = w1_ref.shape[-1]
    ff = jnp.zeros(x.shape, jnp.float32)
    # Static loop over hidden-dim chunks caps the (R, ffn_block) transient
    # (ffn_block == hidden at small sizes => single iteration).
    for c0 in range(0, hidden, ffn_block):
        w1c = w1_ref[0, :, pl.ds(c0, ffn_block)]               # (D, fb)
        b1c = bb1_ref[0, :, pl.ds(c0, ffn_block)]              # (1, fb) f32
        hmid = jnp.dot(xn2, w1c, preferred_element_type=jnp.float32) + b1c
        hmid = 0.5 * hmid * (1.0 + jax.lax.erf(hmid * 0.7071067811865476))
        ff = ff + jnp.dot(hmid.astype(mxu_dtype),
                          w2_ref[0, pl.ds(c0, ffn_block), :],
                          preferred_element_type=jnp.float32)
    ff = ff + bb2_ref[0]

    acc_ref[...] = x1 + ff

    @pl.when(layer == pl.num_programs(1) - 1)
    def _():
        o_ref[...] = acc_ref[...].astype(o_ref.dtype)


def _pack_params(layer_params, heads, dim_head, mxu_dtype):
    """Stack per-layer params along a leading depth axis; keep lane-dense layouts."""
    inner = heads * dim_head
    scale = dim_head ** -0.5

    def stack(name):
        return jnp.stack([p[name] for p in layer_params], axis=0)

    # wqkv columns are ordered [q | k | v].  Fold the softmax scale into the Q
    # columns (in f32, before the bf16 cast).
    wqkv = stack("wqkv")                                  # (depth, D, 3*inner)
    wqkv = wqkv.at[:, :, :inner].multiply(scale)

    return dict(
        g1=stack("g1"), b1=stack("b1"),                   # (depth, 1, D) f32
        wqkv=wqkv.astype(mxu_dtype),                      # (depth, D, 3*inner)
        wo=stack("wo").astype(mxu_dtype),                 # (depth, inner, D)
        g2=stack("g2"), b2=stack("b2"),
        w1=stack("w1").astype(mxu_dtype),                 # (depth, D, H)
        bb1=stack("bb1"),                                 # (depth, 1, H) f32
        w2=stack("w2").astype(mxu_dtype),                 # (depth, H, D)
        bb2=stack("bb2"),                                 # (depth, 1, D) f32
    )


def transformer_forward(x, layer_params, *, heads, dim_head, batch_block=None,
                        ffn_block=None, mxu_dtype=jnp.bfloat16,
                        vmem_limit_bytes=48 * 1024 * 1024):
    """Full Transformer forward: all layers fused into a single pallas_call.

    batch_block: rows of the batch folded into one tile.  Default = B (one tile;
    best for single-TC v5e/v6e).  On v7x pass batch_block = B // 2 so both
    TensorCores get a "parallel" tile (one extra weight pass, no more).
    """
    B, N, D = x.shape
    depth = len(layer_params)
    inner = heads * dim_head
    if batch_block is None:
        batch_block = B
    assert B % batch_block == 0
    rows = batch_block * N

    packed = _pack_params(layer_params, heads, dim_head, mxu_dtype)
    names = ("g1", "b1", "wqkv", "wo", "g2", "b2", "w1", "bb1", "w2", "bb2")
    w_list = [packed[n] for n in names]

    hidden = packed["w1"].shape[-1]
    if ffn_block is None:
        ffn_block = hidden
    assert hidden % ffn_block == 0

    def layer_spec(arr):
        nd = arr.ndim

        def imap(bt, l, nd=nd):
            return (l,) + (0,) * (nd - 1)

        return pl.BlockSpec((1,) + tuple(arr.shape[1:]), imap)

    kernel = functools.partial(
        _fused_transformer_kernel,
        heads=heads, dim_head=dim_head, tokens=N,
        batch_block=batch_block, ffn_block=ffn_block)

    out = pl.pallas_call(
        kernel,
        out_shape=jax.ShapeDtypeStruct((B * N, D), x.dtype),
        grid=(B // batch_block, depth),
        in_specs=[pl.BlockSpec((rows, D), lambda bt, l: (bt, 0))]
                 + [layer_spec(w) for w in w_list],
        out_specs=pl.BlockSpec((rows, D), lambda bt, l: (bt, 0)),
        scratch_shapes=[pltpu.VMEM((rows, D), jnp.float32),
                        pltpu.VMEM((rows, inner), jnp.float32)],
        compiler_params=pltpu.CompilerParams(
            dimension_semantics=("parallel", "arbitrary"),
            vmem_limit_bytes=vmem_limit_bytes),
        # x is only read at layer 0 and the output tile has identical
        # shape/dtype -> reuse the HBM buffer.
        input_output_aliases={0: 0},
    )(x.reshape(B * N, D), *w_list)

    return out.reshape(B, N, D)


def init_transformer_params(key, depth, dim, heads, dim_head, mlp_dim_ratio):
    inner = heads * dim_head
    hidden = dim * mlp_dim_ratio
    layers = []
    for i in range(depth):
        k = jax.random.fold_in(key, i)
        k1, k2, k3, k4 = jax.random.split(k, 4)
        layers.append(dict(
            g1=jnp.ones((1, dim), jnp.float32),
            b1=jnp.zeros((1, dim), jnp.float32),
            wqkv=(0.02 * jax.random.normal(k1, (dim, 3 * inner))).astype(jnp.float32),
            wo=(0.02 * jax.random.normal(k2, (inner, dim))).astype(jnp.float32),
            g2=jnp.ones((1, dim), jnp.float32),
            b2=jnp.zeros((1, dim), jnp.float32),
            w1=(0.02 * jax.random.normal(k3, (dim, hidden))).astype(jnp.float32),
            bb1=jnp.zeros((1, hidden), jnp.float32),
            w2=(0.02 * jax.random.normal(k4, (hidden, dim))).astype(jnp.float32),
            bb2=jnp.zeros((1, dim), jnp.float32),
        ))
    return layers


def _reference_forward(x, layer_params, *, heads, dim_head):
    """Plain-JAX (f32) reference matching the PyTorch module in eval mode."""
    scale = dim_head ** -0.5
    B, N, D = x.shape
    inner = heads * dim_head

    def ln(y, g, b):
        mu = y.mean(-1, keepdims=True)
        var = ((y - mu) ** 2).mean(-1, keepdims=True)
        return (y - mu) / jnp.sqrt(var + 1e-5) * g + b

    for p in layer_params:
        xn = ln(x, p["g1"], p["b1"])
        qkv = xn @ p["wqkv"]
        q, k, v = jnp.split(qkv, 3, axis=-1)

        def split_heads(t):
            return t.reshape(B, N, heads, dim_head).transpose(0, 2, 1, 3)

        q, k, v = map(split_heads, (q, k, v))
        dots = jnp.einsum("bhid,bhjd->bhij", q, k) * scale
        attn = jax.nn.softmax(dots, axis=-1)
        out = jnp.einsum("bhij,bhjd->bhid", attn, v)
        out = out.transpose(0, 2, 1, 3).reshape(B, N, inner)
        x = x + out @ p["wo"]

        xn2 = ln(x, p["g2"], p["b2"])
        h = xn2 @ p["w1"] + p["bb1"]
        h = 0.5 * h * (1.0 + jax.lax.erf(h / jnp.sqrt(2.0)))
        x = x + h @ p["w2"] + p["bb2"]
    return x


if __name__ == "__main__":
    # Small, module-consistent shapes.
    B, N, D = 2, 8, 32          # batch, tokens (num_patches), dim
    depth, heads, dim_head = 2, 4, 8
    mlp_dim_ratio = 2

    key = jax.random.PRNGKey(0)
    kx, kp = jax.random.split(key)
    x = jax.random.normal(kx, (B, N, D), dtype=jnp.float32)
    params = init_transformer_params(kp, depth, D, heads, dim_head, mlp_dim_ratio)

    out = transformer_forward(x, params, heads=heads, dim_head=dim_head)
    jax.block_until_ready(out)

    ref = _reference_forward(x, params, heads=heads, dim_head=dim_head)
    max_err = float(jnp.max(jnp.abs(out - ref)))

    assert out.shape == (B, N, D) and out.dtype == jnp.float32
    # bf16 MXU inputs (f32 accumulate) + approx softmax reciprocal vs f32 ref.
    assert max_err < 1e-2, f"max abs error vs reference: {max_err}"
    print("KERNEL_OK")
</pallas_src>

<mosaic_0001>
module attributes {stable_mosaic.version = 11 : i64} {
  func.func @_fused_transformer_kernel(%arg0: i32, %arg1: i32, %arg2: memref<16x32xf32, #tpu.memory_space<vmem>>, %arg3: memref<1x1x32xf32, #tpu.memory_space<vmem>>, %arg4: memref<1x1x32xf32, #tpu.memory_space<vmem>>, %arg5: memref<1x32x96xbf16, #tpu.memory_space<vmem>>, %arg6: memref<1x32x32xbf16, #tpu.memory_space<vmem>>, %arg7: memref<1x1x32xf32, #tpu.memory_space<vmem>>, %arg8: memref<1x1x32xf32, #tpu.memory_space<vmem>>, %arg9: memref<1x32x64xbf16, #tpu.memory_space<vmem>>, %arg10: memref<1x1x64xf32, #tpu.memory_space<vmem>>, %arg11: memref<1x64x32xbf16, #tpu.memory_space<vmem>>, %arg12: memref<1x1x32xf32, #tpu.memory_space<vmem>>, %arg13: memref<16x32xf32, #tpu.memory_space<vmem>>, %arg14: memref<16x32xf32, #tpu.memory_space<vmem>>, %arg15: memref<16x32xf32, #tpu.memory_space<vmem>>) attributes {dimension_semantics = [#tpu.dimension_semantics<parallel>, #tpu.dimension_semantics<arbitrary>], iteration_bounds = array<i64: 1, 2>, scalar_prefetch = 0 : i64, scratch_operands = 2 : i64, tpu.core_type = #tpu.core_type<tc>, window_params = [{transform_indices = @transform_0, window_bounds = array<i64: 16, 32>}, {transform_indices = @transform_1, window_bounds = array<i64: 1, 1, 32>}, {transform_indices = @transform_2, window_bounds = array<i64: 1, 1, 32>}, {transform_indices = @transform_3, window_bounds = array<i64: 1, 32, 96>}, {transform_indices = @transform_4, window_bounds = array<i64: 1, 32, 32>}, {transform_indices = @transform_5, window_bounds = array<i64: 1, 1, 32>}, {transform_indices = @transform_6, window_bounds = array<i64: 1, 1, 32>}, {transform_indices = @transform_7, window_bounds = array<i64: 1, 32, 64>}, {transform_indices = @transform_8, window_bounds = array<i64: 1, 1, 64>}, {transform_indices = @transform_9, window_bounds = array<i64: 1, 64, 32>}, {transform_indices = @transform_10, window_bounds = array<i64: 1, 1, 32>}, {transform_indices = @transform_11, window_bounds = array<i64: 16, 32>}]} {
    %c0_i32 = arith.constant 0 : i32
    %0 = arith.cmpi eq, %arg1, %c0_i32 : i32
    %1 = arith.extui %0 : i1 to i32
    %c0_i32_0 = arith.constant 0 : i32
    %2 = arith.cmpi ne, %1, %c0_i32_0 : i32
    scf.if %2 {
      %c0_99 = arith.constant 0 : index
      %c0_100 = arith.constant 0 : index
      %225 = vector.load %arg2[%c0_99, %c0_100] : memref<16x32xf32, #tpu.memory_space<vmem>>, vector<16x32xf32>
      %c0_101 = arith.constant 0 : index
      %c0_102 = arith.constant 0 : index
      %226 = vector.load %arg14[%c0_101, %c0_102] : memref<16x32xf32, #tpu.memory_space<vmem>>, vector<16x32xf32>
      tpu.vector_store %arg14[%c0_101, %c0_102], %225 {strides = array<i32>} : memref<16x32xf32, #tpu.memory_space<vmem>>, vector<16x32xf32>,
    } else {
    }
    %c0 = arith.constant 0 : index
    %c0_1 = arith.constant 0 : index
    %3 = vector.load %arg14[%c0, %c0_1] : memref<16x32xf32, #tpu.memory_space<vmem>>, vector<16x32xf32>
    %cst = arith.constant dense<0.000000e+00> : vector<16xf32>
    %4 = vector.multi_reduction <add>, %3, %cst [1] : vector<16x32xf32> to vector<16xf32>
    %5 = vector.shape_cast %4 : vector<16xf32> to vector<16x1xf32>
    %cst_2 = arith.constant 3.200000e+01 : f32
    %6 = vector.broadcast %cst_2 : f32 to vector<16x1xf32>
    %7 = arith.divf %5, %6 : vector<16x1xf32>
    %8 = vector.broadcast %7 : vector<16x1xf32> to vector<16x32xf32>
    %9 = arith.subf %3, %8 : vector<16x32xf32>
    %10 = arith.mulf %9, %9 : vector<16x32xf32>
    %cst_3 = arith.constant dense<0.000000e+00> : vector<16xf32>
    %11 = vector.multi_reduction <add>, %10, %cst_3 [1] : vector<16x32xf32> to vector<16xf32>
    %12 = vector.shape_cast %11 : vector<16xf32> to vector<16x1xf32>
    %cst_4 = arith.constant 3.200000e+01 : f32
    %13 = vector.broadcast %cst_4 : f32 to vector<16x1xf32>
    %14 = arith.divf %12, %13 : vector<16x1xf32>
    %15 = vector.broadcast %7 : vector<16x1xf32> to vector<16x32xf32>
    %16 = arith.subf %3, %15 : vector<16x32xf32>
    %cst_5 = arith.constant 9.99999974E-6 : f32
    %17 = vector.broadcast %cst_5 : f32 to vector<16x1xf32>
    %18 = arith.addf %14, %17 : vector<16x1xf32>
    %19 = math.rsqrt %18 : vector<16x1xf32>
    %20 = vector.broadcast %19 : vector<16x1xf32> to vector<16x32xf32>
    %21 = arith.mulf %16, %20 : vector<16x32xf32>
    %c0_6 = arith.constant 0 : index
    %c0_7 = arith.constant 0 : index
    %c0_8 = arith.constant 0 : index
    %22 = vector.load %arg3[%c0_6, %c0_7, %c0_8] : memref<1x1x32xf32, #tpu.memory_space<vmem>>, vector<1x1x32xf32>
    %23 = vector.shape_cast %22 : vector<1x1x32xf32> to vector<1x32xf32>
    %24 = vector.broadcast %23 : vector<1x32xf32> to vector<16x32xf32>
    %25 = arith.mulf %21, %24 : vector<16x32xf32>
    %c0_9 = arith.constant 0 : index
    %c0_10 = arith.constant 0 : index
    %c0_11 = arith.constant 0 : index
    %26 = vector.load %arg4[%c0_9, %c0_10, %c0_11] : memref<1x1x32xf32, #tpu.memory_space<vmem>>, vector<1x1x32xf32>
    %27 = vector.shape_cast %26 : vector<1x1x32xf32> to vector<1x32xf32>
    %28 = vector.broadcast %27 : vector<1x32xf32> to vector<16x32xf32>
    %29 = arith.addf %25, %28 : vector<16x32xf32>
    %30 = arith.truncf %29 : vector<16x32xf32> to vector<16x32xbf16>
    %c0_12 = arith.constant 0 : index
    %c0_13 = arith.constant 0 : index
    %c0_14 = arith.constant 0 : index
    %31 = vector.load %arg5[%c0_12, %c0_13, %c0_14] : memref<1x32x96xbf16, #tpu.memory_space<vmem>>, vector<1x32x96xbf16>
    %32 = vector.shape_cast %31 : vector<1x32x96xbf16> to vector<32x96xbf16>
    %cst_15 = arith.constant dense<0.000000e+00> : vector<16x96xf32>
    %33 = tpu.matmul %30, %32, %cst_15 {dimension_numbers = #tpu.dot_dimension_numbers<[1], [0], [0], [1], [0, 0, 1, 1], [], []>} : vector<16x32xbf16>, vector<32x96xbf16>, vector<16x96xf32> -> vector<16x96xf32>
    %34 = vector.extract_strided_slice %33 {offsets = [0, 0], sizes = [8, 8], strides = [1, 1]} : vector<16x96xf32> to vector<8x8xf32>
    %35 = vector.extract_strided_slice %33 {offsets = [0, 32], sizes = [8, 8], strides = [1, 1]} : vector<16x96xf32> to vector<8x8xf32>
    %36 = vector.extract_strided_slice %33 {offsets = [0, 64], sizes = [8, 8], strides = [1, 1]} : vector<16x96xf32> to vector<8x8xf32>
    %cst_16 = arith.constant dense<0.000000e+00> : vector<8x8xf32>
    %37 = tpu.matmul %34, %35, %cst_16 {dimension_numbers = #tpu.dot_dimension_numbers<[1], [1], [0], [0], [0, 0, 1, 0], [], []>} : vector<8x8xf32>, vector<8x8xf32>, vector<8x8xf32> -> vector<8x8xf32>
    %cst_17 = arith.constant dense<0xFF800000> : vector<8xf32>
    %38 = vector.multi_reduction <maximumf>, %37, %cst_17 [1] : vector<8x8xf32> to vector<8xf32>
    %39 = vector.shape_cast %38 : vector<8xf32> to vector<8x1xf32>
    %40 = vector.broadcast %39 : vector<8x1xf32> to vector<8x8xf32>
    %41 = arith.subf %37, %40 : vector<8x8xf32>
    %42 = math.exp %41 : vector<8x8xf32>
    %cst_18 = arith.constant dense<0.000000e+00> : vector<8xf32>
    %43 = vector.multi_reduction <add>, %42, %cst_18 [1] : vector<8x8xf32> to vector<8xf32>
    %44 = vector.shape_cast %43 : vector<8xf32> to vector<8x1xf32>
    %45 = tpu.reciprocal %44 {approx = true} : vector<8x1xf32> -> vector<8x1xf32>
    %46 = vector.broadcast %45 : vector<8x1xf32> to vector<8x8xf32>
    %47 = arith.mulf %42, %46 : vector<8x8xf32>
    %cst_19 = arith.constant dense<0.000000e+00> : vector<8x8xf32>
    %48 = tpu.matmul %47, %36, %cst_19 {dimension_numbers = #tpu.dot_dimension_numbers<[1], [0], [0], [1], [0, 0, 1, 1], [], []>} : vector<8x8xf32>, vector<8x8xf32>, vector<8x8xf32> -> vector<8x8xf32>
    %c0_20 = arith.constant 0 : index
    %c0_21 = arith.constant 0 : index
    %49 = vector.load %arg15[%c0_20, %c0_21] : memref<16x32xf32, #tpu.memory_space<vmem>>, vector<8x8xf32>
    tpu.vector_store %arg15[%c0_20, %c0_21], %48 {strides = array<i32>} : memref<16x32xf32, #tpu.memory_space<vmem>>, vector<8x8xf32>,
    %50 = vector.extract_strided_slice %33 {offsets = [0, 8], sizes = [8, 8], strides = [1, 1]} : vector<16x96xf32> to vector<8x8xf32>
    %51 = vector.extract_strided_slice %33 {offsets = [0, 40], sizes = [8, 8], strides = [1, 1]} : vector<16x96xf32> to vector<8x8xf32>
    %52 = vector.extract_strided_slice %33 {offsets = [0, 72], sizes = [8, 8], strides = [1, 1]} : vector<16x96xf32> to vector<8x8xf32>
    %cst_22 = arith.constant dense<0.000000e+00> : vector<8x8xf32>
    %53 = tpu.matmul %50, %51, %cst_22 {dimension_numbers = #tpu.dot_dimension_numbers<[1], [1], [0], [0], [0, 0, 1, 0], [], []>} : vector<8x8xf32>, vector<8x8xf32>, vector<8x8xf32> -> vector<8x8xf32>
    %cst_23 = arith.constant dense<0xFF800000> : vector<8xf32>
    %54 = vector.multi_reduction <maximumf>, %53, %cst_23 [1] : vector<8x8xf32> to vector<8xf32>
    %55 = vector.shape_cast %54 : vector<8xf32> to vector<8x1xf32>
    %56 = vector.broadcast %55 : vector<8x1xf32> to vector<8x8xf32>
    %57 = arith.subf %53, %56 : vector<8x8xf32>
    %58 = math.exp %57 : vector<8x8xf32>
    %cst_24 = arith.constant dense<0.000000e+00> : vector<8xf32>
    %59 = vector.multi_reduction <add>, %58, %cst_24 [1] : vector<8x8xf32> to vector<8xf32>
    %60 = vector.shape_cast %59 : vector<8xf32> to vector<8x1xf32>
    %61 = tpu.reciprocal %60 {approx = true} : vector<8x1xf32> -> vector<8x1xf32>
    %62 = vector.broadcast %61 : vector<8x1xf32> to vector<8x8xf32>
    %63 = arith.mulf %58, %62 : vector<8x8xf32>
    %cst_25 = arith.constant dense<0.000000e+00> : vector<8x8xf32>
    %64 = tpu.matmul %63, %52, %cst_25 {dimension_numbers = #tpu.dot_dimension_numbers<[1], [0], [0], [1], [0, 0, 1, 1], [], []>} : vector<8x8xf32>, vector<8x8xf32>, vector<8x8xf32> -> vector<8x8xf32>
    %c0_26 = arith.constant 0 : index
    %c8 = arith.constant 8 : index
    %65 = vector.load %arg15[%c0_26, %c8] : memref<16x32xf32, #tpu.memory_space<vmem>>, vector<8x8xf32>
    tpu.vector_store %arg15[%c0_26, %c8], %64 {strides = array<i32>} : memref<16x32xf32, #tpu.memory_space<vmem>>, vector<8x8xf32>,
    %66 = vector.extract_strided_slice %33 {offsets = [0, 16], sizes = [8, 8], strides = [1, 1]} : vector<16x96xf32> to vector<8x8xf32>
    %67 = vector.extract_strided_slice %33 {offsets = [0, 48], sizes = [8, 8], strides = [1, 1]} : vector<16x96xf32> to vector<8x8xf32>
    %68 = vector.extract_strided_slice %33 {offsets = [0, 80], sizes = [8, 8], strides = [1, 1]} : vector<16x96xf32> to vector<8x8xf32>
    %cst_27 = arith.constant dense<0.000000e+00> : vector<8x8xf32>
    %69 = tpu.matmul %66, %67, %cst_27 {dimension_numbers = #tpu.dot_dimension_numbers<[1], [1], [0], [0], [0, 0, 1, 0], [], []>} : vector<8x8xf32>, vector<8x8xf32>, vector<8x8xf32> -> vector<8x8xf32>
    %cst_28 = arith.constant dense<0xFF800000> : vector<8xf32>
    %70 = vector.multi_reduction <maximumf>, %69, %cst_28 [1] : vector<8x8xf32> to vector<8xf32>
    %71 = vector.shape_cast %70 : vector<8xf32> to vector<8x1xf32>
    %72 = vector.broadcast %71 : vector<8x1xf32> to vector<8x8xf32>
    %73 = arith.subf %69, %72 : vector<8x8xf32>
    %74 = math.exp %73 : vector<8x8xf32>
    %cst_29 = arith.constant dense<0.000000e+00> : vector<8xf32>
    %75 = vector.multi_reduction <add>, %74, %cst_29 [1] : vector<8x8xf32> to vector<8xf32>
    %76 = vector.shape_cast %75 : vector<8xf32> to vector<8x1xf32>
    %77 = tpu.reciprocal %76 {approx = true} : vector<8x1xf32> -> vector<8x1xf32>
    %78 = vector.broadcast %77 : vector<8x1xf32> to vector<8x8xf32>
    %79 = arith.mulf %74, %78 : vector<8x8xf32>
    %cst_30 = arith.constant dense<0.000000e+00> : vector<8x8xf32>
    %80 = tpu.matmul %79, %68, %cst_30 {dimension_numbers = #tpu.dot_dimension_numbers<[1], [0], [0], [1], [0, 0, 1, 1], [], []>} : vector<8x8xf32>, vector<8x8xf32>, vector<8x8xf32> -> vector<8x8xf32>
    %c0_31 = arith.constant 0 : index
    %c16 = arith.constant 16 : index
    %81 = vector.load %arg15[%c0_31, %c16] : memref<16x32xf32, #tpu.memory_space<vmem>>, vector<8x8xf32>
    tpu.vector_store %arg15[%c0_31, %c16], %80 {strides = array<i32>} : memref<16x32xf32, #tpu.memory_space<vmem>>, vector<8x8xf32>,
    %82 = vector.extract_strided_slice %33 {offsets = [0, 24], sizes = [8, 8], strides = [1, 1]} : vector<16x96xf32> to vector<8x8xf32>
    %83 = vector.extract_strided_slice %33 {offsets = [0, 56], sizes = [8, 8], strides = [1, 1]} : vector<16x96xf32> to vector<8x8xf32>
    %84 = vector.extract_strided_slice %33 {offsets = [0, 88], sizes = [8, 8], strides = [1, 1]} : vector<16x96xf32> to vector<8x8xf32>
    %cst_32 = arith.constant dense<0.000000e+00> : vector<8x8xf32>
    %85 = tpu.matmul %82, %83, %cst_32 {dimension_numbers = #tpu.dot_dimension_numbers<[1], [1], [0], [0], [0, 0, 1, 0], [], []>} : vector<8x8xf32>, vector<8x8xf32>, vector<8x8xf32> -> vector<8x8xf32>
    %cst_33 = arith.constant dense<0xFF800000> : vector<8xf32>
    %86 = vector.multi_reduction <maximumf>, %85, %cst_33 [1] : vector<8x8xf32> to vector<8xf32>
    %87 = vector.shape_cast %86 : vector<8xf32> to vector<8x1xf32>
    %88 = vector.broadcast %87 : vector<8x1xf32> to vector<8x8xf32>
    %89 = arith.subf %85, %88 : vector<8x8xf32>
    %90 = math.exp %89 : vector<8x8xf32>
    %cst_34 = arith.constant dense<0.000000e+00> : vector<8xf32>
    %91 = vector.multi_reduction <add>, %90, %cst_34 [1] : vector<8x8xf32> to vector<8xf32>
    %92 = vector.shape_cast %91 : vector<8xf32> to vector<8x1xf32>
    %93 = tpu.reciprocal %92 {approx = true} : vector<8x1xf32> -> vector<8x1xf32>
    %94 = vector.broadcast %93 : vector<8x1xf32> to vector<8x8xf32>
    %95 = arith.mulf %90, %94 : vector<8x8xf32>
    %cst_35 = arith.constant dense<0.000000e+00> : vector<8x8xf32>
    %96 = tpu.matmul %95, %84, %cst_35 {dimension_numbers = #tpu.dot_dimension_numbers<[1], [0], [0], [1], [0, 0, 1, 1], [], []>} : vector<8x8xf32>, vector<8x8xf32>, vector<8x8xf32> -> vector<8x8xf32>
    %c0_36 = arith.constant 0 : index
    %c24 = arith.constant 24 : index
    %97 = vector.load %arg15[%c0_36, %c24] : memref<16x32xf32, #tpu.memory_space<vmem>>, vector<8x8xf32>
    tpu.vector_store %arg15[%c0_36, %c24], %96 {strides = array<i32>} : memref<16x32xf32, #tpu.memory_space<vmem>>, vector<8x8xf32>,
    %98 = vector.extract_strided_slice %33 {offsets = [8, 0], sizes = [8, 8], strides = [1, 1]} : vector<16x96xf32> to vector<8x8xf32>
    %99 = vector.extract_strided_slice %33 {offsets = [8, 32], sizes = [8, 8], strides = [1, 1]} : vector<16x96xf32> to vector<8x8xf32>
    %100 = vector.extract_strided_slice %33 {offsets = [8, 64], sizes = [8, 8], strides = [1, 1]} : vector<16x96xf32> to vector<8x8xf32>
    %cst_37 = arith.constant dense<0.000000e+00> : vector<8x8xf32>
    %101 = tpu.matmul %98, %99, %cst_37 {dimension_numbers = #tpu.dot_dimension_numbers<[1], [1], [0], [0], [0, 0, 1, 0], [], []>} : vector<8x8xf32>, vector<8x8xf32>, vector<8x8xf32> -> vector<8x8xf32>
    %cst_38 = arith.constant dense<0xFF800000> : vector<8xf32>
    %102 = vector.multi_reduction <maximumf>, %101, %cst_38 [1] : vector<8x8xf32> to vector<8xf32>
    %103 = vector.shape_cast %102 : vector<8xf32> to vector<8x1xf32>
    %104 = vector.broadcast %103 : vector<8x1xf32> to vector<8x8xf32>
    %105 = arith.subf %101, %104 : vector<8x8xf32>
    %106 = math.exp %105 : vector<8x8xf32>
    %cst_39 = arith.constant dense<0.000000e+00> : vector<8xf32>
    %107 = vector.multi_reduction <add>, %106, %cst_39 [1] : vector<8x8xf32> to vector<8xf32>
    %108 = vector.shape_cast %107 : vector<8xf32> to vector<8x1xf32>
    %109 = tpu.reciprocal %108 {approx = true} : vector<8x1xf32> -> vector<8x1xf32>
    %110 = vector.broadcast %109 : vector<8x1xf32> to vector<8x8xf32>
    %111 = arith.mulf %106, %110 : vector<8x8xf32>
    %cst_40 = arith.constant dense<0.000000e+00> : vector<8x8xf32>
    %112 = tpu.matmul %111, %100, %cst_40 {dimension_numbers = #tpu.dot_dimension_numbers<[1], [0], [0], [1], [0, 0, 1, 1], [], []>} : vector<8x8xf32>, vector<8x8xf32>, vector<8x8xf32> -> vector<8x8xf32>
    %c8_41 = arith.constant 8 : index
    %c0_42 = arith.constant 0 : index
    %113 = vector.load %arg15[%c8_41, %c0_42] : memref<16x32xf32, #tpu.memory_space<vmem>>, vector<8x8xf32>
    tpu.vector_store %arg15[%c8_41, %c0_42], %112 {strides = array<i32>} : memref<16x32xf32, #tpu.memory_space<vmem>>, vector<8x8xf32>,
    %114 = vector.extract_strided_slice %33 {offsets = [8, 8], sizes = [8, 8], strides = [1, 1]} : vector<16x96xf32> to vector<8x8xf32>
    %115 = vector.extract_strided_slice %33 {offsets = [8, 40], sizes = [8, 8], strides = [1, 1]} : vector<16x96xf32> to vector<8x8xf32>
    %116 = vector.extract_strided_slice %33 {offsets = [8, 72], sizes = [8, 8], strides = [1, 1]} : vector<16x96xf32> to vector<8x8xf32>
    %cst_43 = arith.constant dense<0.000000e+00> : vector<8x8xf32>
    %117 = tpu.matmul %114, %115, %cst_43 {dimension_numbers = #tpu.dot_dimension_numbers<[1], [1], [0], [0], [0, 0, 1, 0], [], []>} : vector<8x8xf32>, vector<8x8xf32>, vector<8x8xf32> -> vector<8x8xf32>
    %cst_44 = arith.constant dense<0xFF800000> : vector<8xf32>
    %118 = vector.multi_reduction <maximumf>, %117, %cst_44 [1] : vector<8x8xf32> to vector<8xf32>
    %119 = vector.shape_cast %118 : vector<8xf32> to vector<8x1xf32>
    %120 = vector.broadcast %119 : vector<8x1xf32> to vector<8x8xf32>
    %121 = arith.subf %117, %120 : vector<8x8xf32>
    %122 = math.exp %121 : vector<8x8xf32>
    %cst_45 = arith.constant dense<0.000000e+00> : vector<8xf32>
    %123 = vector.multi_reduction <add>, %122, %cst_45 [1] : vector<8x8xf32> to vector<8xf32>
    %124 = vector.shape_cast %123 : vector<8xf32> to vector<8x1xf32>
    %125 = tpu.reciprocal %124 {approx = true} : vector<8x1xf32> -> vector<8x1xf32>
    %126 = vector.broadcast %125 : vector<8x1xf32> to vector<8x8xf32>
    %127 = arith.mulf %122, %126 : vector<8x8xf32>
    %cst_46 = arith.constant dense<0.000000e+00> : vector<8x8xf32>
    %128 = tpu.matmul %127, %116, %cst_46 {dimension_numbers = #tpu.dot_dimension_numbers<[1], [0], [0], [1], [0, 0, 1, 1], [], []>} : vector<8x8xf32>, vector<8x8xf32>, vector<8x8xf32> -> vector<8x8xf32>
    %c8_47 = arith.constant 8 : index
    %c8_48 = arith.constant 8 : index
    %129 = vector.load %arg15[%c8_47, %c8_48] : memref<16x32xf32, #tpu.memory_space<vmem>>, vector<8x8xf32>
    tpu.vector_store %arg15[%c8_47, %c8_48], %128 {strides = array<i32>} : memref<16x32xf32, #tpu.memory_space<vmem>>, vector<8x8xf32>,
    %130 = vector.extract_strided_slice %33 {offsets = [8, 16], sizes = [8, 8], strides = [1, 1]} : vector<16x96xf32> to vector<8x8xf32>
    %131 = vector.extract_strided_slice %33 {offsets = [8, 48], sizes = [8, 8], strides = [1, 1]} : vector<16x96xf32> to vector<8x8xf32>
    %132 = vector.extract_strided_slice %33 {offsets = [8, 80], sizes = [8, 8], strides = [1, 1]} : vector<16x96xf32> to vector<8x8xf32>
    %cst_49 = arith.constant dense<0.000000e+00> : vector<8x8xf32>
    %133 = tpu.matmul %130, %131, %cst_49 {dimension_numbers = #tpu.dot_dimension_numbers<[1], [1], [0], [0], [0, 0, 1, 0], [], []>} : vector<8x8xf32>, vector<8x8xf32>, vector<8x8xf32> -> vector<8x8xf32>
    %cst_50 = arith.constant dense<0xFF800000> : vector<8xf32>
    %134 = vector.multi_reduction <maximumf>, %133, %cst_50 [1] : vector<8x8xf32> to vector<8xf32>
    %135 = vector.shape_cast %134 : vector<8xf32> to vector<8x1xf32>
    %136 = vector.broadcast %135 : vector<8x1xf32> to vector<8x8xf32>
    %137 = arith.subf %133, %136 : vector<8x8xf32>
    %138 = math.exp %137 : vector<8x8xf32>
    %cst_51 = arith.constant dense<0.000000e+00> : vector<8xf32>
    %139 = vector.multi_reduction <add>, %138, %cst_51 [1] : vector<8x8xf32> to vector<8xf32>
    %140 = vector.shape_cast %139 : vector<8xf32> to vector<8x1xf32>
    %141 = tpu.reciprocal %140 {approx = true} : vector<8x1xf32> -> vector<8x1xf32>
    %142 = vector.broadcast %141 : vector<8x1xf32> to vector<8x8xf32>
    %143 = arith.mulf %138, %142 : vector<8x8xf32>
    %cst_52 = arith.constant dense<0.000000e+00> : vector<8x8xf32>
    %144 = tpu.matmul %143, %132, %cst_52 {dimension_numbers = #tpu.dot_dimension_numbers<[1], [0], [0], [1], [0, 0, 1, 1], [], []>} : vector<8x8xf32>, vector<8x8xf32>, vector<8x8xf32> -> vector<8x8xf32>
    %c8_53 = arith.constant 8 : index
    %c16_54 = arith.constant 16 : index
    %145 = vector.load %arg15[%c8_53, %c16_54] : memref<16x32xf32, #tpu.memory_space<vmem>>, vector<8x8xf32>
    tpu.vector_store %arg15[%c8_53, %c16_54], %144 {strides = array<i32>} : memref<16x32xf32, #tpu.memory_space<vmem>>, vector<8x8xf32>,
    %146 = vector.extract_strided_slice %33 {offsets = [8, 24], sizes = [8, 8], strides = [1, 1]} : vector<16x96xf32> to vector<8x8xf32>
    %147 = vector.extract_strided_slice %33 {offsets = [8, 56], sizes = [8, 8], strides = [1, 1]} : vector<16x96xf32> to vector<8x8xf32>
    %148 = vector.extract_strided_slice %33 {offsets = [8, 88], sizes = [8, 8], strides = [1, 1]} : vector<16x96xf32> to vector<8x8xf32>
    %cst_55 = arith.constant dense<0.000000e+00> : vector<8x8xf32>
    %149 = tpu.matmul %146, %147, %cst_55 {dimension_numbers = #tpu.dot_dimension_numbers<[1], [1], [0], [0], [0, 0, 1, 0], [], []>} : vector<8x8xf32>, vector<8x8xf32>, vector<8x8xf32> -> vector<8x8xf32>
    %cst_56 = arith.constant dense<0xFF800000> : vector<8xf32>
    %150 = vector.multi_reduction <maximumf>, %149, %cst_56 [1] : vector<8x8xf32> to vector<8xf32>
    %151 = vector.shape_cast %150 : vector<8xf32> to vector<8x1xf32>
    %152 = vector.broadcast %151 : vector<8x1xf32> to vector<8x8xf32>
    %153 = arith.subf %149, %152 : vector<8x8xf32>
    %154 = math.exp %153 : vector<8x8xf32>
    %cst_57 = arith.constant dense<0.000000e+00> : vector<8xf32>
    %155 = vector.multi_reduction <add>, %154, %cst_57 [1] : vector<8x8xf32> to vector<8xf32>
    %156 = vector.shape_cast %155 : vector<8xf32> to vector<8x1xf32>
    %157 = tpu.reciprocal %156 {approx = true} : vector<8x1xf32> -> vector<8x1xf32>
    %158 = vector.broadcast %157 : vector<8x1xf32> to vector<8x8xf32>
    %159 = arith.mulf %154, %158 : vector<8x8xf32>
    %cst_58 = arith.constant dense<0.000000e+00> : vector<8x8xf32>
    %160 = tpu.matmul %159, %148, %cst_58 {dimension_numbers = #tpu.dot_dimension_numbers<[1], [0], [0], [1], [0, 0, 1, 1], [], []>} : vector<8x8xf32>, vector<8x8xf32>, vector<8x8xf32> -> vector<8x8xf32>
    %c8_59 = arith.constant 8 : index
    %c24_60 = arith.constant 24 : index
    %161 = vector.load %arg15[%c8_59, %c24_60] : memref<16x32xf32, #tpu.memory_space<vmem>>, vector<8x8xf32>
    tpu.vector_store %arg15[%c8_59, %c24_60], %160 {strides = array<i32>} : memref<16x32xf32, #tpu.memory_space<vmem>>, vector<8x8xf32>,
    %c0_61 = arith.constant 0 : index
    %c0_62 = arith.constant 0 : index
    %162 = vector.load %arg15[%c0_61, %c0_62] : memref<16x32xf32, #tpu.memory_space<vmem>>, vector<16x32xf32>
    %163 = arith.truncf %162 : vector<16x32xf32> to vector<16x32xbf16>
    %c0_63 = arith.constant 0 : index
    %c0_64 = arith.constant 0 : index
    %c0_65 = arith.constant 0 : index
    %164 = vector.load %arg6[%c0_63, %c0_64, %c0_65] : memref<1x32x32xbf16, #tpu.memory_space<vmem>>, vector<1x32x32xbf16>
    %165 = vector.shape_cast %164 : vector<1x32x32xbf16> to vector<32x32xbf16>
    %cst_66 = arith.constant dense<0.000000e+00> : vector<16x32xf32>
    %166 = tpu.matmul %163, %165, %cst_66 {dimension_numbers = #tpu.dot_dimension_numbers<[1], [0], [0], [1], [0, 0, 1, 1], [], []>} : vector<16x32xbf16>, vector<32x32xbf16>, vector<16x32xf32> -> vector<16x32xf32>
    %167 = arith.addf %3, %166 : vector<16x32xf32>
    %cst_67 = arith.constant dense<0.000000e+00> : vector<16xf32>
    %168 = vector.multi_reduction <add>, %167, %cst_67 [1] : vector<16x32xf32> to vector<16xf32>
    %169 = vector.shape_cast %168 : vector<16xf32> to vector<16x1xf32>
    %cst_68 = arith.constant 3.200000e+01 : f32
    %170 = vector.broadcast %cst_68 : f32 to vector<16x1xf32>
    %171 = arith.divf %169, %170 : vector<16x1xf32>
    %172 = vector.broadcast %171 : vector<16x1xf32> to vector<16x32xf32>
    %173 = arith.subf %167, %172 : vector<16x32xf32>
    %174 = arith.mulf %173, %173 : vector<16x32xf32>
    %cst_69 = arith.constant dense<0.000000e+00> : vector<16xf32>
    %175 = vector.multi_reduction <add>, %174, %cst_69 [1] : vector<16x32xf32> to vector<16xf32>
    %176 = vector.shape_cast %175 : vector<16xf32> to vector<16x1xf32>
    %cst_70 = arith.constant 3.200000e+01 : f32
    %177 = vector.broadcast %cst_70 : f32 to vector<16x1xf32>
    %178 = arith.divf %176, %177 : vector<16x1xf32>
    %179 = vector.broadcast %171 : vector<16x1xf32> to vector<16x32xf32>
    %180 = arith.subf %167, %179 : vector<16x32xf32>
    %cst_71 = arith.constant 9.99999974E-6 : f32
    %181 = vector.broadcast %cst_71 : f32 to vector<16x1xf32>
    %182 = arith.addf %178, %181 : vector<16x1xf32>
    %183 = math.rsqrt %182 : vector<16x1xf32>
    %184 = vector.broadcast %183 : vector<16x1xf32> to vector<16x32xf32>
    %185 = arith.mulf %180, %184 : vector<16x32xf32>
    %c0_72 = arith.constant 0 : index
    %c0_73 = arith.constant 0 : index
    %c0_74 = arith.constant 0 : index
    %186 = vector.load %arg7[%c0_72, %c0_73, %c0_74] : memref<1x1x32xf32, #tpu.memory_space<vmem>>, vector<1x1x32xf32>
    %187 = vector.shape_cast %186 : vector<1x1x32xf32> to vector<1x32xf32>
    %188 = vector.broadcast %187 : vector<1x32xf32> to vector<16x32xf32>
    %189 = arith.mulf %185, %188 : vector<16x32xf32>
    %c0_75 = arith.constant 0 : index
    %c0_76 = arith.constant 0 : index
    %c0_77 = arith.constant 0 : index
    %190 = vector.load %arg8[%c0_75, %c0_76, %c0_77] : memref<1x1x32xf32, #tpu.memory_space<vmem>>, vector<1x1x32xf32>
    %191 = vector.shape_cast %190 : vector<1x1x32xf32> to vector<1x32xf32>
    %192 = vector.broadcast %191 : vector<1x32xf32> to vector<16x32xf32>
    %193 = arith.addf %189, %192 : vector<16x32xf32>
    %194 = arith.truncf %193 : vector<16x32xf32> to vector<16x32xbf16>
    %cst_78 = arith.constant 0.000000e+00 : f32
    %195 = vector.broadcast %cst_78 : f32 to vector<16x32xf32>
    %c0_79 = arith.constant 0 : index
    %c0_80 = arith.constant 0 : index
    %c0_81 = arith.constant 0 : index
    %196 = vector.load %arg9[%c0_79, %c0_80, %c0_81] : memref<1x32x64xbf16, #tpu.memory_space<vmem>>, vector<1x32x64xbf16>
    %197 = vector.shape_cast %196 : vector<1x32x64xbf16> to vector<32x64xbf16>
    %c0_82 = arith.constant 0 : index
    %c0_83 = arith.constant 0 : index
    %c0_84 = arith.constant 0 : index
    %198 = vector.load %arg10[%c0_82, %c0_83, %c0_84] : memref<1x1x64xf32, #tpu.memory_space<vmem>>, vector<1x1x64xf32>
    %199 = vector.shape_cast %198 : vector<1x1x64xf32> to vector<1x64xf32>
    %cst_85 = arith.constant dense<0.000000e+00> : vector<16x64xf32>
    %200 = tpu.matmul %194, %197, %cst_85 {dimension_numbers = #tpu.dot_dimension_numbers<[1], [0], [0], [1], [0, 0, 1, 1], [], []>} : vector<16x32xbf16>, vector<32x64xbf16>, vector<16x64xf32> -> vector<16x64xf32>
    %201 = vector.broadcast %199 : vector<1x64xf32> to vector<16x64xf32>
    %202 = arith.addf %200, %201 : vector<16x64xf32>
    %cst_86 = arith.constant 5.000000e-01 : f32
    %203 = vector.broadcast %cst_86 : f32 to vector<16x64xf32>
    %204 = arith.mulf %203, %202 : vector<16x64xf32>
    %cst_87 = arith.constant 0.707106769 : f32
    %205 = vector.broadcast %cst_87 : f32 to vector<16x64xf32>
    %206 = arith.mulf %202, %205 : vector<16x64xf32>
    %207 = math.erf %206 : vector<16x64xf32>
    %cst_88 = arith.constant 1.000000e+00 : f32
    %208 = vector.broadcast %cst_88 : f32 to vector<16x64xf32>
    %209 = arith.addf %208, %207 : vector<16x64xf32>
    %210 = arith.mulf %204, %209 : vector<16x64xf32>
    %211 = arith.truncf %210 : vector<16x64xf32> to vector<16x64xbf16>
    %c0_89 = arith.constant 0 : index
    %c0_90 = arith.constant 0 : index
    %c0_91 = arith.constant 0 : index
    %212 = vector.load %arg11[%c0_89, %c0_90, %c0_91] : memref<1x64x32xbf16, #tpu.memory_space<vmem>>, vector<1x64x32xbf16>
    %213 = vector.shape_cast %212 : vector<1x64x32xbf16> to vector<64x32xbf16>
    %cst_92 = arith.constant dense<0.000000e+00> : vector<16x32xf32>
    %214 = tpu.matmul %211, %213, %cst_92 {dimension_numbers = #tpu.dot_dimension_numbers<[1], [0], [0], [1], [0, 0, 1, 1], [], []>} : vector<16x64xbf16>, vector<64x32xbf16>, vector<16x32xf32> -> vector<16x32xf32>
    %215 = arith.addf %195, %214 : vector<16x32xf32>
    %c0_93 = arith.constant 0 : index
    %c0_94 = arith.constant 0 : index
    %c0_95 = arith.constant 0 : index
    %216 = vector.load %arg12[%c0_93, %c0_94, %c0_95] : memref<1x1x32xf32, #tpu.memory_space<vmem>>, vector<1x1x32xf32>
    %217 = vector.shape_cast %216 : vector<1x1x32xf32> to vector<1x32xf32>
    %218 = vector.broadcast %217 : vector<1x32xf32> to vector<16x32xf32>
    %219 = arith.addf %215, %218 : vector<16x32xf32>
    %220 = arith.addf %167, %219 : vector<16x32xf32>
    %c0_96 = arith.constant 0 : index
    %c0_97 = arith.constant 0 : index
    %221 = vector.load %arg14[%c0_96, %c0_97] : memref<16x32xf32, #tpu.memory_space<vmem>>, vector<16x32xf32>
    tpu.vector_store %arg14[%c0_96, %c0_97], %220 {strides = array<i32>} : memref<16x32xf32, #tpu.memory_space<vmem>>, vector<16x32xf32>,
    %c1_i32 = arith.constant 1 : i32
    %222 = arith.cmpi eq, %arg1, %c1_i32 : i32
    %223 = arith.extui %222 : i1 to i32
    %c0_i32_98 = arith.constant 0 : i32
    %224 = arith.cmpi ne, %223, %c0_i32_98 : i32
    scf.if %224 {
      %c0_99 = arith.constant 0 : index
      %c0_100 = arith.constant 0 : index
      %225 = vector.load %arg14[%c0_99, %c0_100] : memref<16x32xf32, #tpu.memory_space<vmem>>, vector<16x32xf32>
      %c0_101 = arith.constant 0 : index
      %c0_102 = arith.constant 0 : index
      %226 = vector.load %arg13[%c0_101, %c0_102] : memref<16x32xf32, #tpu.memory_space<vmem>>, vector<16x32xf32>
      tpu.vector_store %arg13[%c0_101, %c0_102], %225 {strides = array<i32>} : memref<16x32xf32, #tpu.memory_space<vmem>>, vector<16x32xf32>,
    } else {
    }
    return
  }
  func.func @transform_0(%arg0: i32, %arg1: i32) -> (i32, i32) {
    %c0_i32 = arith.constant 0 : i32
    %c0_i32_0 = arith.constant 0 : i32
    return %arg0, %c0_i32 : i32, i32
  }
  func.func @transform_1(%arg0: i32, %arg1: i32) -> (i32, i32, i32) {
    %c0_i32 = arith.constant 0 : i32
    %c0_i32_0 = arith.constant 0 : i32
    %c0_i32_1 = arith.constant 0 : i32
    return %arg1, %c0_i32, %c0_i32_0 : i32, i32, i32
  }
  func.func @transform_2(%arg0: i32, %arg1: i32) -> (i32, i32, i32) {
    %c0_i32 = arith.constant 0 : i32
    %c0_i32_0 = arith.constant 0 : i32
    %c0_i32_1 = arith.constant 0 : i32
    return %arg1, %c0_i32, %c0_i32_0 : i32, i32, i32
  }
  func.func @transform_3(%arg0: i32, %arg1: i32) -> (i32, i32, i32) {
    %c0_i32 = arith.constant 0 : i32
    %c0_i32_0 = arith.constant 0 : i32
    %c0_i32_1 = arith.constant 0 : i32
    return %arg1, %c0_i32, %c0_i32_0 : i32, i32, i32
  }
  func.func @transform_4(%arg0: i32, %arg1: i32) -> (i32, i32, i32) {
    %c0_i32 = arith.constant 0 : i32
    %c0_i32_0 = arith.constant 0 : i32
    %c0_i32_1 = arith.constant 0 : i32
    return %arg1, %c0_i32, %c0_i32_0 : i32, i32, i32
  }
  func.func @transform_5(%arg0: i32, %arg1: i32) -> (i32, i32, i32) {
    %c0_i32 = arith.constant 0 : i32
    %c0_i32_0 = arith.constant 0 : i32
    %c0_i32_1 = arith.constant 0 : i32
    return %arg1, %c0_i32, %c0_i32_0 : i32, i32, i32
  }
  func.func @transform_6(%arg0: i32, %arg1: i32) -> (i32, i32, i32) {
    %c0_i32 = arith.constant 0 : i32
    %c0_i32_0 = arith.constant 0 : i32
    %c0_i32_1 = arith.constant 0 : i32
    return %arg1, %c0_i32, %c0_i32_0 : i32, i32, i32
  }
  func.func @transform_7(%arg0: i32, %arg1: i32) -> (i32, i32, i32) {
    %c0_i32 = arith.constant 0 : i32
    %c0_i32_0 = arith.constant 0 : i32
    %c0_i32_1 = arith.constant 0 : i32
    return %arg1, %c0_i32, %c0_i32_0 : i32, i32, i32
  }
  func.func @transform_8(%arg0: i32, %arg1: i32) -> (i32, i32, i32) {
    %c0_i32 = arith.constant 0 : i32
    %c0_i32_0 = arith.constant 0 : i32
    %c0_i32_1 = arith.constant 0 : i32
    return %arg1, %c0_i32, %c0_i32_0 : i32, i32, i32
  }
  func.func @transform_9(%arg0: i32, %arg1: i32) -> (i32, i32, i32) {
    %c0_i32 = arith.constant 0 : i32
    %c0_i32_0 = arith.constant 0 : i32
    %c0_i32_1 = arith.constant 0 : i32
    return %arg1, %c0_i32, %c0_i32_0 : i32, i32, i32
  }
  func.func @transform_10(%arg0: i32, %arg1: i32) -> (i32, i32, i32) {
    %c0_i32 = arith.constant 0 : i32
    %c0_i32_0 = arith.constant 0 : i32
    %c0_i32_1 = arith.constant 0 : i32
    return %arg1, %c0_i32, %c0_i32_0 : i32, i32, i32
  }
  func.func @transform_11(%arg0: i32, %arg1: i32) -> (i32, i32) {
    %c0_i32 = arith.constant 0 : i32
    %c0_i32_0 = arith.constant 0 : i32
    return %arg0, %c0_i32 : i32, i32
  }
}

</mosaic_0001>

<bundles_post_ra>
// kernel: tpu_custom_call.1
= control target key start
LH: loop header
LB: loop body
LE: loop exit
PB: predicated region body
PF: predicated region fallthrough
CT: control target
= control target key end

     0   :  { %s2621_s0 = inlined_call_operand.hbm [shape: f32[16,32], index: 0, kind: input, shape index: {}, may-alias: {0,11}]   ;;  %s2622_s1 = inlined_call_operand.vmem [shape: f32[2,1,32], index: 1, kind: input, shape index: {}]   ;;  %s2623_s2 = inlined_call_operand.vmem [shape: f32[2,1,32], index: 2, kind: input, shape index: {}]   ;;  %s2624_s3 = inlined_call_operand.vmem [shape: bf16[2,32,96], index: 3, kind: input, shape index: {}]   ;;  %s2625_s4 = inlined_call_operand.vmem [shape: bf16[2,32,32], index: 4, kind: input, shape index: {}]   ;;  %s2626_s5 = inlined_call_operand.vmem [shape: f32[2,1,32], index: 5, kind: input, shape index: {}]   ;;  %s2627_s6 = inlined_call_operand.vmem [shape: f32[2,1,32], index: 6, kind: input, shape index: {}]   ;;  %s2628_s7 = inlined_call_operand.vmem [shape: bf16[2,32,64], index: 7, kind: input, shape index: {}]   ;;  %s2629_s8 = inlined_call_operand.hbm [shape: f32[2,1,64], index: 8, kind: input, shape index: {}]   ;;  %s2630_s9 = inlined_call_operand.vmem [shape: bf16[2,64,32], index: 9, kind: input, shape index: {}]   ;;  %s2631_s10 = inlined_call_operand.hbm [shape: f32[2,1,32], index: 10, kind: input, shape index: {}]   ;;  %s2632_s11 = inlined_call_operand.hbm [shape: f32[16,32], index: 11, kind: output, shape index: {}, may-alias: {0,11}]  }
   0x1   :  { %2637 = sst [smem:[#allocation19_spill]] %s2621_s0 }
   0x2   :  { %2638 = sst [smem:[#allocation20_spill]] %s2629_s8 }
   0x3   :  { %2639 = sst [smem:[#allocation21_spill]] %s2631_s10 }
   0x4   :  { %16 = vsyncpa [#allocation5], 0 }
   0x5   :  { %17 = vsyncpa [#allocation8], 0 }
   0x6   :  { %19 = vsyncpa [#allocation8 + $0x1], 0 }
   0x7   :  { %20 = vsyncpa [#allocation6], 0  ;;  %s2246_s17 = smov 0   ;;  %s2248_s18 = smov 0  }
   0x8   :  { %s2250_s19 = smov 0   ;;  %s2252_s20 = smov 0  }
   0x9   :  { %s2254_s21 = smov 0   ;;  %s2256_s22 = smov 0  }
   0xa LB: > { %2640 = sst [smem:[#allocation14_spill]] %s2148_s18  ;;  %s35_s23 = sadd.s32 1, %s2160_s21  ;;  %s2164_s22 = sphi %s2256_s22, %s26_s22   ;;  %s2160_s21 = sphi %s2254_s21, %s2659_s21   ;;  %s2156_s20 = sphi %s2252_s20, %s2658_s20   ;;  %s2152_s19 = sphi %s2250_s19, %s2657_s19   ;;  %s2148_s18 = sphi %s2248_s18, %s2656_s18   ;;  %s2144_s17 = sphi %s2246_s17, %s2655_s17  }
   0xb   : > { %2641 = sst [smem:[#allocation15_spill]] %s2152_s19  ;;  %s253_s24 = sadd.s32 1, %s2152_s19 }
   0xc   : > { %2642 = sst [smem:[#allocation16_spill]] %s2160_s21  ;;  %p36_p0 = scmp.ge.s32.totalorder %s35_s23, 2 }
   0xd   : > { %p260_p1 = scmp.ne.s32.totalorder %s2152_s19, %s2148_s18  ;;  %p261_p2 = scmp.eq.s32.totalorder %s2164_s22, 0 }
   0xe   : > { %p266_p3 = scmp.ne.s32.totalorder %s2148_s18, %s2144_s17  ;;  %s2661_s23 = smov (%p36_p0, %s35_s23), 0 }
   0xf   : > { %2643 = sst [smem:[#allocation17_spill]] %s2661_s23  ;;  %p2285_p4 = por %p261_p2, %p260_p1 }
  0x10   : > { %s250_s26 = ssub.s32 %s2160_s21, %s2661_s23  ;;  %p1864_p5 = scmp.lt.s32.totalorder %s2164_s22, 2 }
  0x11   : > { %p251_p6 = scmp.eq.s32.totalorder %s250_s26, 0  ;;  %s433_s27 = sand.u32 1, %s2164_s22  }
  0x12   : > { %s435_s28 = sand.u32 1, %s2152_s19   ;;  %s2646_s8 = sld [smem:[#allocation20_spill]] }
  0x13   : > { %s2295_s29 = scalar_select %p251_p6, %s2152_s19, %s253_s24  }
  0x14   : > { %s436_s15 = scalar_lea.vmem [#allocation7], %s435_s28  ;;  %p2303_p7 = pnand %p1864_p5, %p2285_p4 }
  0x15   : > { %2645 = sst [smem:[#allocation18_spill]] %s2295_s29  ;;  %s443_s16 = sshll.u32 %s436_s15, 4  ;;  %s444_s16 = int_to_ptr.vmem [resolvable:$true] %s443_s16 }
  0x16   : > { %s2308_s26 = sadd.s32 4294967295, %s2164_s22   ;;  %s434_s24 = scalar_lea.sflag [#allocation8], %s433_s27 }
  0x17   : > { %p267_p8 = scmp.eq.s32.totalorder %s2308_s26, 0  ;;  %p1737_p9 = scmp.ge.s32.totalorder %s2164_s22, 1 }
  0x18   : > { %s439_s13 = scalar_lea.hbm %s2646_s8, %s2160_s21  ;;  %p355_p10 = scmp.lt.s32.totalorder %s2164_s22, 3 }
  0x19   : > { %s441_s14 = sshll.u32 %s439_s13, 4  ;;  %p2320_p11 = por %p267_p8, %p266_p3  ;;  %s442_s14 = int_to_ptr.hbm [resolvable:$true] %s441_s14 }
  0x1a   : > { %1859 = dma.hbm_to_vmem [thread:$0]  (!%p2303_p7), %s442_s14, 16, %s444_s16, %s434_s24  }
  0x1b   : > { %s2649_s0 = sld [smem:[#allocation19_spill]]  ;;  %p2327_p12 = pnand %p1737_p9, %p355_p10 }
  0x1c   : > { %s2166_s27 = smov [#allocation4]   ;;  %s2651_s10 = sld [smem:[#allocation21_spill]] }
  0x1d   : > { %p1852_p13 = pneg %p2327_p12  ;;  %s371_s17 = sshll.u32 %s2166_s27, 4  ;;  %s372_s17 = int_to_ptr.vmem [resolvable:$true] %s371_s17 }
  0x1e   : > { %s461_s12 = scalar_lea.vmem [#allocation9], %s435_s28  ;;  %s2167_s29 = smov 128  }
  0x1f   : > { %p1853_p0 = pnand %p1852_p13, %p267_p8  ;;  %s2168_s19 = smov 8  }
  0x21   : > { %s369_s13 = sshll.u32 %s2649_s0, 4  ;;  %s468_s0 = sshll.u32 %s461_s12, 4  ;;  %s370_s13 = int_to_ptr.hbm [resolvable:$true] %s369_s13  ;;  %s469_s0 = int_to_ptr.vmem [resolvable:$true] %s468_s0 }
  0x22   : > { %s464_s8 = scalar_lea.hbm %s2651_s10, %s2160_s21  ;;  %477 = sbr.rel (%p2327_p12) target bundleno = 2890 (0xb4a), region = 64 }
  0x23   : > { %s466_s30 = sshll.u32 %s464_s8, 4  ;;  %s467_s30 = int_to_ptr.hbm [resolvable:$true] %s466_s30 }
  0x24   : > { %1855 = dma.hbm_to_vmem [thread:$0]  (!%p1853_p0), %s370_s13, 256, %s372_s17, [#allocation5], %s2167_s29, %s2167_s29, %s2168_s19  }
  0x25   : > { %1862 = dma.hbm_to_vmem [thread:$0]  (!%p2303_p7), %s467_s30, 16, %s469_s0, %s434_s24  }
  0x27   : > { %2131 = dma.done.wait (%p267_p8), [#allocation5], 256  }
  0x28   : > { %2133 = vsyncadd (%p267_p8), [#allocation5], 4294967040  ;;  %s484_s8 = sand.u32 1, %s2308_s26   ;;  %s486_s28 = sand.u32 1, %s2148_s18  }
  0x29   : > { %s485_s27 = scalar_lea.sflag [#allocation8], %s484_s8  ;;  %s2349_s14 = scalar_lea.vmem [#allocation7], %s486_s28 }
  0x2a   : > { %2135 = dma.done.wait (%p2320_p11), %s485_s27, 32  }
  0x2b   : > { %2137 = vsyncadd (%p2320_p11), %s485_s27, 4294967264  ;;  %p567_p1 = scmp.lt.s32.totalorder %s2156_s20, 1  ;;  %s2397_s8 = scalar_lea.vmem [#allocation9], %s486_s28 }
  0x2c   : > { %p1750_p2 = scmp.ne.s32.totalorder %s2156_s20, 0 }
  0x2d   : > { %s2357_s0 = scalar_select %p567_p1, %s2156_s20, 1 }
  0x2e   : > { %604 = sbr.rel (%p1750_p2) target bundleno = 54 (0x36), region = 80 }
  0x2f   : > { %s1826_s15 = sshll.u32 %s2357_s0, 4  ;;  %s588_s24 = scalar_lea.vmem %s2627_s6, %s2357_s0 }
  0x30   : > { %s2375_s27 = scalar_lea.vmem %s2624_s3, %s1826_s15  ;;  %s2380_s10 = scalar_lea.vmem %s2625_s4, %s1826_s15 }
  0x31   : > { %s2389_s18 = scalar_lea.vmem %s2628_s7, %s1826_s15  ;;  %s1829_s17 = sshll.u32 %s2357_s0, 5 }
  0x32   : > { %s2395_s12 = scalar_lea.vmem %s2630_s9, %s1829_s17 }
  0x33   : > { %v605_v0 = vld [vmem:[#allocation4] sm:$0xff]  ;;  %vm607_vm0 = vcmask 261120   ;;  %v606_v1 = vld [vmem:[#allocation4 + $0x8] sm:$0xff] }
  0x34   : > { %608 = vst.msk [vmem:[#allocation2] sm:$0xff] %vm607_vm0, %v605_v0 }
  0x35   : > { %609 = vst.msk [vmem:[#allocation2 + $0x8] sm:$0xff] %vm607_vm0, %v606_v1 }
  0x36 PF: > { %vm612_vm1 = vcmask 261120   ;;  %v2169_v6 = vmov 32.0   ;;  %v1831_v23 = vld [vmem:[%s2375_s27 + $0x8] sm:$0xff]  ;;  %v1830_v25 = vld [vmem:[%s2375_s27] sm:$0xff]  ;;  %s2652_s29 = scalar_lea.vmem %s2622_s1, %s2357_s0  ;;  %s2653_s30 = scalar_lea.vmem %s2623_s2, %s2357_s0  ;;  %vm713_vm9 = vcmask 64512   ;;  %vm845_vm10 = vcmask 130112  }
  0x37   : > { %1942 = vrcp.f32 %v2169_v6  ;;  %702 = vmatpush.bf16.msra.mxu0 %v1831_v23  ;;  %v1936_v44 = vld [vmem:[%s2652_s29] ss:$0 sm:$0xff]  ;;  %s2170_s27 = smov 120   ;;  %s2171_s19 = smov 88   ;;  %vm916_vm11 = vcmask 195712   ;;  %vm987_vm12 = vcmask 261312  }
  0x38   : > { %v1937_v49 = vld [vmem:[%s2653_s30] ss:$0 sm:$0xff]  ;;  %s2172_s23 = smov 96   ;;  %s2173_s13 = smov 64  }
  0x39   : > { %s2174_s17 = smov 112   ;;  %s2175_s16 = smov 56  }
  0x3a   : > { %s2176_s21 = smov 72   ;;  %s2177_s28 = smov 104  }
  0x3b   : > { %v2400_v2 = vld [vmem:[#allocation2] sm:$0xff]  ;;  %703 = vmatpush.bf16.msra.mxu0 %v1830_v25  ;;  %s2178_s29 = smov 80   ;;  %s2179_s25 = smov 48  }
  0x3c   : > { %v613_v3 = vsel %vm612_vm1, %v2400_v2, 0.0  ;;  %v2404_v4 = vld [vmem:[#allocation2 + $0x8] sm:$0xff]  ;;  %s2180_s15 = smov 40   ;;  %s2181_s30 = smov 8  }
  0x3d   : > { %614 = vadd.xlane.f32.xlu0 %v613_v3  ;;  %v616_v5 = vsel %vm612_vm1, %v2404_v4, 0.0  ;;  %v1943_v7 = vpop.eup %1942  ;;  %p1821_p3 = scmp.ne.s32.totalorder %s2156_s20, 1 }
  0x3e   : > { %v620_v8 = vmul.f32 32.0, %v1943_v7  ;;  %vm624_vm2 = vweird.f32 %v1943_v7 }
  0x40   : > { %v621_v9 = vsub.f32 1.0, %v620_v8 }
  0x42   : > { %v622_v10 = vmul.f32 %v1943_v7, %v621_v9 }
  0x44   : > { %v623_v11 = vadd.f32 %v1943_v7, %v622_v10 }
  0x45   : > { %617 = vadd.xlane.f32.xlu0 %v616_v5 }
  0x46   : > { %v2408_v12 = vsel %vm624_vm2, %v1943_v7, %v623_v11 }
  0xb0   : > { %v615_v13 = vpop.xlane.xlu0 %614 }
  0xb1   : > { %v626_v14 = vmul.f32 %v2408_v12, %v615_v13 }
  0xb3   : > { %v628_v15 = vsub.f32 %v2400_v2, %v626_v14 }
  0xb5   : > { %v630_v16 = vmul.f32 %v628_v15, %v628_v15 }
  0xb7   : > { %v632_v17 = vsel %vm612_vm1, %v630_v16, 0.0 }
  0xb8   : > { %633 = vadd.xlane.f32.xlu1 %v632_v17  ;;  %v618_v18 = vpop.xlane.xlu0 %617 }
  0xb9   : > { %v627_v19 = vmul.f32 %v2408_v12, %v618_v18 }
  0xbb   : > { %v629_v20 = vsub.f32 %v2404_v4, %v627_v19 }
  0xbd   : > { %v631_v21 = vmul.f32 %v629_v20, %v629_v20 }
  0xbf   : > { %v635_v22 = vsel %vm612_vm1, %v631_v21, 0.0 }
  0xc0   : > { %636 = vadd.xlane.f32.xlu1 %v635_v22 }
 0x12b   : > { %v634_v24 = vpop.xlane.xlu1 %633 }
 0x12c   : > { %v638_v26 = vmul.f32 %v634_v24, %v2408_v12 }
 0x12e   : > { %v640_v27 = vadd.f32 1e-05, %v638_v26 }
 0x130   : > { %1944 = vrsqrt.f32 %v640_v27  ;;  %vm648_vm4 = vweird.f32 %v640_v27 }
 0x133   : > { %v637_v28 = vpop.xlane.xlu1 %636 }
 0x134   : > { %v639_v29 = vmul.f32 %v637_v28, %v2408_v12 }
 0x136   : > { %v1945_v30 = vpop.eup %1944  ;;  %v641_v31 = vadd.f32 1e-05, %v639_v29 }
 0x137   : > { %v643_v32 = vmul.f32 %v1945_v30, %v640_v27  ;;  %vm649_vm3 = vweird.f32 %v1945_v30 }
 0x138   : > { %1946 = vrsqrt.f32 %v641_v31  ;;  %vm650_vm5 = vmor %vm648_vm4, %vm649_vm3  ;;  %vm658_vm7 = vweird.f32 %v641_v31 }
 0x139   : > { %v644_v33 = vmul.f32 %v1945_v30, %v643_v32 }
 0x13b   : > { %v645_v34 = vmul.f32 0.5, %v644_v33 }
 0x13d   : > { %v646_v35 = vsub.f32 1.5, %v645_v34 }
 0x13e   : > { %v1947_v36 = vpop.eup %1946 }
 0x13f   : > { %v647_v37 = vmul.f32 %v1945_v30, %v646_v35  ;;  %v653_v38 = vmul.f32 %v1947_v36, %v641_v31  ;;  %vm659_vm6 = vweird.f32 %v1947_v36 }
 0x140   : > { %vm660_vm8 = vmor %vm658_vm7, %vm659_vm6 }
 0x141   : > { %v654_v39 = vmul.f32 %v1947_v36, %v653_v38  ;;  %v651_v40 = vsel %vm650_vm5, %v1945_v30, %v647_v37 }
 0x142   : > { %v662_v43 = vmul.f32 %v651_v40, %v628_v15 }
 0x143   : > { %v655_v41 = vmul.f32 0.5, %v654_v39 }
 0x144   : > { %v668_v48 = vmul.f32 %v1936_v44, %v662_v43 }
 0x145   : > { %v656_v42 = vsub.f32 1.5, %v655_v41 }
 0x146   : > { %v674_v51 = vadd.f32 %v1937_v49, %v668_v48 }
 0x147   : > { %v657_v45 = vmul.f32 %v1947_v36, %v656_v42 }
 0x149   : > { %v661_v46 = vsel %vm660_vm8, %v1947_v36, %v657_v45 }
 0x14a   : > { %v663_v47 = vmul.f32 %v661_v46, %v629_v20 }
 0x14c   : > { %v669_v50 = vmul.f32 %v1936_v44, %v663_v47 }
 0x14e   : > { %v675_v52 = vadd.f32 %v1937_v49, %v669_v50 }
 0x150   : > { %v676_v53 = vpack.c.bf16 %v675_v52, %v674_v51 }
 0x152   : > { %1759 = vmatmul.msk.bf16.vlgmr.msra.gmra.mxu0 %vm612_vm1, %v676_v53 }
 0x1cf   : > { %v2431_v54 = vpop.f32.mrf.mxu0 }
 0x1d0   : > { %776 = vrot.lane.b32.xlu0 %v2431_v54, %s2170_s27  ;;  %778 = vrot.lane.b32.xlu1 %v2431_v54, %s2171_s19 }
 0x1d1   : > { %711 = vrot.lane.b32.xlu2 %v2431_v54, %s2172_s23 }
 0x1d7   : > { %v2455_v63 = vpop.f32.mrf.mxu0 }
 0x1d8   : > { %749 = vrot.lane.b32.xlu1 %v2431_v54, %s2173_s13 }
 0x1e0   : > { %847 = vrot.lane.b32.xlu1 %v2431_v54, %s2174_s17 }
 0x22b   : > { %v712_v55 = vpop.permute.xlu2 %711 }
 0x22c   : > { %1760 = vmatpush.xpose.msk.msra.mxu1 %vm713_vm9, %v712_v55 }
 0x22f   : > { %1761 = vmatmul.msk.f32.vlgmr.msra.gmra.mxu1 %vm713_vm9, %v2431_v54 }
 0x242   : > { %v779_v56 = vpop.permute.xlu1 %778  ;;  %v777_v57 = vpop.permute.xlu0 %776 }
 0x243   : > { %1763 = vmatpush.xpose.msk.msra.mxu3 %vm713_vm9, %v779_v56 }
 0x246   : > { %1764 = vmatmul.msk.f32.vlgmr.msra.gmra.mxu3 %vm713_vm9, %v777_v57 }
 0x24a   : > { %v750_v58 = vpop.permute.xlu1 %749 }
 0x24b   : > { %770 = vmatpush.msrb.mxu1 %v750_v58 }
 0x252   : > { %v848_v19 = vpop.permute.xlu1 %847 }
 0x2ac   : > { %v735_v59 = vpop.f32.mrf.mxu1 }
 0x2ad   : > { %v738_v60 = vsel %vm713_vm9, %v735_v59, -inf }
 0x2ae   : > { %739 = vmax.xlane.f32.xlu2 %v738_v60 }
 0x2c9   : > { %v801_v61 = vpop.f32.mrf.mxu3 }
 0x2ca   : > { %v804_v62 = vsel %vm713_vm9, %v801_v61, -inf }
 0x2cb   : > { %805 = vmax.xlane.f32.xlu2 %v804_v62 }
 0x2e3   : > { %815 = vrot.lane.b32.xlu2 %v2431_v54, %s2175_s16 }
 0x2eb   : > { %920 = vrot.lane.b32.xlu2 %v2431_v54, %s2176_s21 }
 0x2f3   : > { %918 = vrot.lane.b32.xlu2 %v2431_v54, %s2177_s28 }
 0x2fb   : > { %1056 = vrot.lane.b32.xlu2 %v2455_v63, %s2171_s19  ;;  %s2183_s19 = smov 24  }
 0x303   : > { %1054 = vrot.lane.b32.xlu2 %v2455_v63, %s2170_s27  ;;  %s2182_s27 = smov 16  }
 0x321   : > { %v740_v0 = vpop.xlane.xlu2 %739 }
 0x322   : > { %v741_v1 = vsub.f32 %v735_v59, %v740_v0 }
 0x324   : > { %v742_v3 = vmul.f32 1.442695, %v741_v1 }
 0x326   : > { %1948 = vpow2.f32 %v742_v3 }
 0x32c   : > { %v1949_v5 = vpop.eup %1948 }
 0x32d   : > { %v744_v6 = vsel %vm713_vm9, %v1949_v5, 0.0 }
 0x32e   : > { %745 = vadd.xlane.f32.xlu0 %v744_v6 }
 0x33e   : > { %v806_v7 = vpop.xlane.xlu2 %805 }
 0x33f   : > { %v807_v8 = vsub.f32 %v801_v61, %v806_v7 }
 0x341   : > { %v808_v9 = vmul.f32 1.442695, %v807_v8 }
 0x342   : > { %849 = vrot.lane.b32.xlu0 %v2431_v54, %s2178_s29 }
 0x343   : > { %1950 = vpow2.f32 %v808_v9 }
 0x346   : > { %v816_v10 = vpop.permute.xlu2 %815 }
 0x347   : > { %836 = vmatpush.msra.mxu2 %v816_v10 }
 0x349   : > { %v1951_v11 = vpop.eup %1950 }
 0x34a   : > { %v810_v13 = vsel %vm713_vm9, %v1951_v11, 0.0 }
 0x34b   : > { %811 = vadd.xlane.f32.xlu1 %v810_v13 }
 0x34e   : > { %v921_v14 = vpop.permute.xlu2 %920 }
 0x34f   : > { %1769 = vmatpush.xpose.msk.msrb.mxu2 %vm713_vm9, %v921_v14 }
 0x356   : > { %v919_v20 = vpop.permute.xlu2 %918 }
 0x35e   : > { %v1057_v24 = vpop.permute.xlu2 %1056 }
 0x364   : > { %990 = vrot.lane.b32.xlu1 %v2455_v63, %s2172_s23  ;;  %s2654_s23 = scalar_lea.vmem %s2626_s5, %s2357_s0 }
 0x366   : > { %v1055_v25 = vpop.permute.xlu2 %1054 }
 0x36c   : > { %1194 = vrot.lane.b32.xlu1 %v2455_v63, %s2177_s28 }
 0x3a1   : > { %v746_v15 = vpop.xlane.xlu0 %745 }
 0x3a2   : > { %1952 = vrcp.f32 %v746_v15 }
 0x3a8   : > { %v1953_v16 = vpop.eup %1952 }
 0x3a9   : > { %v748_v17 = vmul.f32 %v1953_v16, %v1949_v5 }
 0x3ab   : > { %1762 = vmatmul.msk.f32.vlgmr.msrb.gmra.mxu1 %vm713_vm9, %v748_v17 }
 0x3b4   : > { %v850_v18 = vpop.permute.xlu0 %849 }
 0x3b5   : > { %1766 = vmatpush.xpose.msk.msra.mxu1 %vm713_vm9, %v850_v18 }
 0x3b8   : > { %1767 = vmatmul.msk.f32.vlgmr.msra.gmra.mxu1 %vm713_vm9, %v848_v19 }
 0x3be   : > { %v812_v21 = vpop.xlane.xlu1 %811 }
 0x3bf   : > { %1954 = vrcp.f32 %v812_v21 }
 0x3c5   : > { %v1955_v22 = vpop.eup %1954 }
 0x3c6   : > { %v814_v23 = vmul.f32 %v1955_v22, %v1951_v11 }
 0x3c8   : > { %1765 = vmatmul.msk.f32.vlgmr.msra.gmra.mxu2 %vm713_vm9, %v814_v23 }
 0x3c9   : > { %1775 = vmatpush.xpose.msk.msra.mxu2 %vm713_vm9, %v1057_v24 }
 0x3d0   : > { %1770 = vmatmul.msk.f32.vlgmr.msrb.gmra.mxu2 %vm713_vm9, %v919_v20 }
 0x3d6   : > { %v991_v39 = vpop.permute.xlu1 %990 }
 0x3d8   : > { %1776 = vmatmul.msk.f32.vlgmr.msra.gmra.mxu2 %vm713_vm9, %v1055_v25 }
 0x3de   : > { %v1195_v46 = vpop.permute.xlu1 %1194 }
 0x428   : > { %v772_v26 = vpop.f32.mrf.mxu1 }
 0x429   : > { %775 = vst.msk [vmem:[#allocation3] sm:$0xff] %vm713_vm9, %v772_v26 }
 0x435   : > { %v872_v27 = vpop.f32.mrf.mxu1 }
 0x436   : > { %v875_v28 = vsel %vm713_vm9, %v872_v27, -inf }
 0x437   : > { %876 = vmax.xlane.f32.xlu0 %v875_v28 }
 0x44b   : > { %886 = vrot.lane.b32.xlu0 %v2431_v54, %s2179_s25  ;;  %v838_v29 = vpop.f32.mrf.mxu2 }
 0x453   : > { %1126 = vrot.lane.b32.xlu0 %v2455_v63, %s2178_s29  ;;  %v943_v30 = vpop.f32.mrf.mxu2 }
 0x454   : > { %v946_v40 = vsel %vm713_vm9, %v943_v30, -inf }
 0x45b   : > { %1124 = vrot.lane.b32.xlu0 %v2455_v63, %s2174_s17  ;;  %v1079_v31 = vpop.f32.mrf.mxu2 }
 0x45c   : > { %v1082_v32 = vsel %vm713_vm9, %v1079_v31, -inf }
 0x45d   : > { %1083 = vmax.xlane.f32.xlu1 %v1082_v32 }
 0x4aa   : > { %v877_v33 = vpop.xlane.xlu0 %876 }
 0x4ab   : > { %v878_v34 = vsub.f32 %v872_v27, %v877_v33 }
 0x4ad   : > { %v879_v35 = vmul.f32 1.442695, %v878_v34 }
 0x4af   : > { %1956 = vpow2.f32 %v879_v35 }
 0x4b5   : > { %v1957_v36 = vpop.eup %1956 }
 0x4b6   : > { %v881_v37 = vsel %vm713_vm9, %v1957_v36, 0.0 }
 0x4b7   : > { %882 = vadd.xlane.f32.xlu2 %v881_v37 }
 0x4bd   : > { %v887_v38 = vpop.permute.xlu0 %886 }
 0x4be   : > { %907 = vmatpush.msrb.mxu3 %v887_v38 }
 0x4c0   : > { %1772 = vmatpush.xpose.msk.msra.mxu3 %vm713_vm9, %v991_v39 }
 0x4c5   : > { %v1127_v45 = vpop.permute.xlu0 %1126 }
 0x4cd   : > { %v1125_v47 = vpop.permute.xlu0 %1124 }
 0x4cf   : > { %1196 = vrot.lane.b32.xlu2 %v2455_v63, %s2176_s21 }
 0x4d0   : > { %v1084_v55 = vpop.xlane.xlu1 %1083 }
 0x4d1   : > { %v1085_v56 = vsub.f32 %v1079_v31, %v1084_v55 }
 0x4d3   : > { %v1086_v59 = vmul.f32 1.442695, %v1085_v56 }
 0x4f8   : > { %947 = vmax.xlane.f32.xlu2 %v946_v40 }
 0x52a   : > { %v883_v41 = vpop.xlane.xlu2 %882 }
 0x52b   : > { %1958 = vrcp.f32 %v883_v41 }
 0x531   : > { %v1959_v42 = vpop.eup %1958 }
 0x532   : > { %v1197_v43 = vpop.permute.xlu2 %1196  ;;  %v885_v44 = vmul.f32 %v1959_v42, %v1957_v36 }
 0x533   : > { %1781 = vmatpush.xpose.msk.msrb.mxu2 %vm713_vm9, %v1197_v43 }
 0x534   : > { %1768 = vmatmul.msk.f32.vlgmr.msrb.gmra.mxu3 %vm713_vm9, %v885_v44 }
 0x535   : > { %1778 = vmatpush.xpose.msk.msrb.mxu3 %vm713_vm9, %v1127_v45 }
 0x536   : > { %1782 = vmatmul.msk.f32.vlgmr.msrb.gmra.mxu2 %vm713_vm9, %v1195_v46 }
 0x53c   : > { %1773 = vmatmul.msk.f32.vlgmr.msra.gmra.mxu3 %vm713_vm9, %v2455_v63 }
 0x544   : > { %1779 = vmatmul.msk.f32.vlgmr.msrb.gmra.mxu3 %vm713_vm9, %v1125_v47  ;;  %v1833_v47 = vld [vmem:[%s2380_s10 + $0x8] sm:$0xff] }
 0x545   : > { %1292 = vmatpush.bf16.msra.mxu3 %v1833_v47 }
 0x56b   : > { %v948_v48 = vpop.xlane.xlu2 %947 }
 0x56c   : > { %v949_v49 = vsub.f32 %v943_v30, %v948_v48  ;;  %v1832_v48 = vld [vmem:[%s2380_s10] sm:$0xff] }
 0x56d   : > { %1293 = vmatpush.bf16.msra.mxu3 %v1832_v48 }
 0x56e   : > { %v950_v50 = vmul.f32 1.442695, %v949_v49 }
 0x570   : > { %1960 = vpow2.f32 %v950_v50 }
 0x571   : > { %1962 = vpow2.f32 %v1086_v59 }
 0x576   : > { %v1961_v51 = vpop.eup %1960 }
 0x577   : > { %v952_v52 = vsel %vm713_vm9, %v1961_v51, 0.0  ;;  %v2505_v61 = vpop.eup %1962 }
 0x578   : > { %953 = vadd.xlane.f32.xlu1 %v952_v52  ;;  %v1088_v62 = vsel %vm713_vm9, %v2505_v61, 0.0 }
 0x591   : > { %957 = vrot.lane.b32.xlu1 %v2431_v54, %s2180_s15 }
 0x599   : > { %1163 = vrot.lane.b32.xlu1 %v2455_v63, %s2179_s25 }
 0x5a1   : > { %842 = vrot.lane.b32.xlu1 %v838_v29, %s2181_s30 }
 0x5b7   : > { %v909_v53 = vpop.f32.mrf.mxu3 }
 0x5b8   : > { %913 = vrot.lane.b32.xlu1 %v909_v53, %s2182_s27 }
 0x5b9   : > { %v1219_v60 = vpop.f32.mrf.mxu2 }
 0x5ba   : > { %v1222_v54 = vsel %vm713_vm9, %v1219_v60, -inf }
 0x5bf   : > { %v1013_v57 = vpop.f32.mrf.mxu3 }
 0x5c0   : > { %v1016_v58 = vsel %vm713_vm9, %v1013_v57, -inf }
 0x5c1   : > { %1017 = vmax.xlane.f32.xlu0 %v1016_v58 }
 0x5c7   : > { %v1149_v18 = vpop.f32.mrf.mxu3 }
 0x5c8   : > { %v1152_v20 = vsel %vm713_vm9, %v1149_v18, -inf }
 0x5c9   : > { %1223 = vmax.xlane.f32.xlu0 %v1222_v54 }
 0x5d1   : > { %1089 = vadd.xlane.f32.xlu0 %v1088_v62 }
 0x5e5   : > { %1027 = vrot.lane.b32.xlu0 %v2455_v63, %s2173_s13 }
 0x5eb   : > { %v954_v0 = vpop.xlane.xlu1 %953 }
 0x5ec   : > { %1964 = vrcp.f32 %v954_v0 }
 0x5ed   : > { %1233 = vrot.lane.b32.xlu0 %v2455_v63, %s2180_s15 }
 0x5f2   : > { %v1965_v1 = vpop.eup %1964 }
 0x5f3   : > { %v956_v3 = vmul.f32 %v1965_v1, %v1961_v51 }
 0x603   : > { %v958_v5 = vpop.permute.xlu1 %957 }
 0x604   : > { %978 = vmatpush.msrb.mxu1 %v958_v5 }
 0x605   : > { %1771 = vmatmul.msk.f32.vlgmr.msrb.gmra.mxu1 %vm713_vm9, %v956_v3 }
 0x60b   : > { %v1164_v6 = vpop.permute.xlu1 %1163 }
 0x613   : > { %v843_v7 = vpop.permute.xlu1 %842 }
 0x614   : > { %846 = vst.msk [vmem:[#allocation3] sm:$0xff] %vm845_vm10, %v843_v7 }
 0x62a   : > { %v914_v8 = vpop.permute.xlu1 %913 }
 0x62b   : > { %917 = vst.msk [vmem:[#allocation3] sm:$0xff] %vm916_vm11, %v914_v8  ;;  %v1835_v8 = vld [vmem:[%s2389_s18 + $0x8] sm:$0xff] }
 0x634   : > { %v1018_v9 = vpop.xlane.xlu0 %1017 }
 0x635   : > { %v1019_v15 = vsub.f32 %v1013_v57, %v1018_v9 }
 0x637   : > { %v1020_v17 = vmul.f32 1.442695, %v1019_v15 }
 0x63c   : > { %v1224_v10 = vpop.xlane.xlu0 %1223 }
 0x63d   : > { %v1225_v11 = vsub.f32 %v1219_v60, %v1224_v10 }
 0x63f   : > { %v1226_v13 = vmul.f32 1.442695, %v1225_v11 }
 0x641   : > { %1966 = vpow2.f32 %v1226_v13  ;;  %v1834_v13 = vld [vmem:[%s2389_s18] sm:$0xff] }
 0x642   : > { %1968 = vpow2.f32 %v1020_v17 }
 0x644   : > { %v1090_v19 = vpop.xlane.xlu0 %1089 }
 0x647   : > { %v1967_v14 = vpop.eup %1966 }
 0x648   : > { %v1228_v16 = vsel %vm713_vm9, %v1967_v14, 0.0  ;;  %v1969_v21 = vpop.eup %1968 }
 0x649   : > { %1229 = vadd.xlane.f32.xlu2 %v1228_v16  ;;  %v1022_v23 = vsel %vm713_vm9, %v1969_v21, 0.0 }
 0x651   : > { %1153 = vmax.xlane.f32.xlu2 %v1152_v20 }
 0x657   : > { %v1028_v22 = vpop.permute.xlu0 %1027 }
 0x658   : > { %1048 = vmatpush.msrb.mxu0 %v1028_v22 }
 0x659   : > { %1023 = vadd.xlane.f32.xlu2 %v1022_v23 }
 0x65a   : > { %1184 = vmatpush.msra.mxu0 %v1164_v6 }
 0x65f   : > { %v1234_v40 = vpop.permute.xlu0 %1233 }
 0x682   : > { %v980_v33 = vpop.f32.mrf.mxu1 }
 0x6bc   : > { %v1230_v24 = vpop.xlane.xlu2 %1229 }
 0x6c4   : > { %v1154_v25 = vpop.xlane.xlu2 %1153 }
 0x6c5   : > { %v1155_v26 = vsub.f32 %v1149_v18, %v1154_v25 }
 0x6c7   : > { %v1156_v27 = vmul.f32 1.442695, %v1155_v26 }
 0x6c9   : > { %1970 = vpow2.f32 %v1156_v27 }
 0x6cc   : > { %v1024_v28 = vpop.xlane.xlu2 %1023 }
 0x6cd   : > { %1972 = vrcp.f32 %v1024_v28 }
 0x6ce   : > { %1974 = vrcp.f32 %v1090_v19 }
 0x6cf   : > { %v1971_v29 = vpop.eup %1970 }
 0x6d0   : > { %v1158_v30 = vsel %vm713_vm9, %v1971_v29, 0.0 }
 0x6d1   : > { %1159 = vadd.xlane.f32.xlu2 %v1158_v30 }
 0x6d3   : > { %v1973_v31 = vpop.eup %1972 }
 0x6d4   : > { %v1026_v32 = vmul.f32 %v1973_v31, %v1969_v21  ;;  %v1975_v35 = vpop.eup %1974 }
 0x6d5   : > { %v1092_v37 = vmul.f32 %v1975_v35, %v2505_v61 }
 0x6d6   : > { %1774 = vmatmul.msk.f32.vlgmr.msrb.gmra.mxu0 %vm713_vm9, %v1026_v32  ;;  %v1939_v32 = vld [vmem:[%s588_s24] ss:$0 sm:$0xff] }
 0x6d7   : > { %1388 = vmatpush.bf16.msrb.mxu0 %v1835_v8 }
 0x6db   : > { %1389 = vmatpush.bf16.msrb.mxu0 %v1834_v13  ;;  %v1837_v13 = vld [vmem:[%s2395_s12 + $0x8] sm:$0xff] }
 0x6e9   : > { %1093 = vrot.lane.b32.xlu2 %v2455_v63, %s2175_s16 }
 0x6f1   : > { %984 = vrot.lane.b32.xlu2 %v980_v33, %s2183_s19 }
 0x744   : > { %v1160_v34 = vpop.xlane.xlu2 %1159 }
 0x745   : > { %1976 = vrcp.f32 %v1160_v34 }
 0x746   : > { %1978 = vrcp.f32 %v1230_v24 }
 0x74b   : > { %v1977_v36 = vpop.eup %1976 }
 0x74c   : > { %v1162_v38 = vmul.f32 %v1977_v36, %v1971_v29  ;;  %v1094_v39 = vpop.permute.xlu2 %1093  ;;  %v1979_v63 = vpop.eup %1978 }
 0x74d   : > { %1114 = vmatpush.msra.mxu1 %v1094_v39  ;;  %v1232_v42 = vmul.f32 %v1979_v63, %v1967_v14  ;;  %v1940_v39 = vld [vmem:[%s2349_s14] ss:$0 sm:$0xff] }
 0x74e   : > { %1777 = vmatmul.msk.f32.vlgmr.msra.gmra.mxu1 %vm713_vm9, %v1092_v37  ;;  %1780 = vmatmul.msk.f32.vlgmr.msra.gmra.mxu0 %vm713_vm9, %v1162_v38 }
 0x74f   : > { %1254 = vmatpush.msrb.mxu1 %v1234_v40 }
 0x753   : > { %v1050_v41 = vpop.f32.mrf.mxu0 }
 0x754   : > { %1053 = vst.msk [vmem:[#allocation3 + $0x8] sm:$0xff] %vm713_vm9, %v1050_v41  ;;  %v985_v43 = vpop.permute.xlu2 %984 }
 0x755   : > { %988 = vst.msk [vmem:[#allocation3] sm:$0xff] %vm987_vm12, %v985_v43 }
 0x756   : > { %1783 = vmatmul.msk.f32.vlgmr.msrb.gmra.mxu1 %vm713_vm9, %v1232_v42 }
 0x75c   : > { %v1264_v52 = vld [vmem:[#allocation3] sm:$0xff] }
 0x7cb   : > { %v1116_v44 = vpop.f32.mrf.mxu1  ;;  %v1186_v45 = vpop.f32.mrf.mxu0 }
 0x7cc   : > { %1120 = vrot.lane.b32.xlu0 %v1116_v44, %s2181_s30 }
 0x7d3   : > { %v1256_v46 = vpop.f32.mrf.mxu1 }
 0x7d4   : > { %1260 = vrot.lane.b32.xlu1 %v1256_v46, %s2183_s19  ;;  %1190 = vrot.lane.b32.xlu0 %v1186_v45, %s2182_s27 }
 0x83e   : > { %v1121_v49 = vpop.permute.xlu0 %1120 }
 0x83f   : > { %1123 = vst.msk [vmem:[#allocation3 + $0x8] sm:$0xff] %vm845_vm10, %v1121_v49 }
 0x846   : > { %v1191_v50 = vpop.permute.xlu0 %1190  ;;  %v1261_v51 = vpop.permute.xlu1 %1260 }
 0x847   : > { %1193 = vst.msk [vmem:[#allocation3 + $0x8] sm:$0xff] %vm916_vm11, %v1191_v50 }
 0x848   : > { %1263 = vst.msk [vmem:[#allocation3 + $0x8] sm:$0xff] %vm987_vm12, %v1261_v51  ;;  %vm1521_vm12 = vcmask 523264  }
 0x84f   : > { %v1265_v53 = vld [vmem:[#allocation3 + $0x8] sm:$0xff] }
 0x850   : > { %v1266_v55 = vpack.c.bf16 %v1265_v53, %v1264_v52 }
 0x852   : > { %1792 = vmatmul.msk.bf16.vlgmr.msra.gmra.mxu3 %vm612_vm1, %v1266_v55 }
 0x8d5   : > { %v1295_v56 = vpop.f32.mrf.mxu3 }
 0x8d6   : > { %v2537_v57 = vadd.f32 %v1295_v56, %v2400_v2 }
 0x8d8   : > { %v1302_v58 = vsel %vm612_vm1, %v2537_v57, 0.0 }
 0x8d9   : > { %1303 = vadd.xlane.f32.xlu0 %v1302_v58 }
 0x8dd   : > { %v1297_v59 = vpop.f32.mrf.mxu3 }
 0x8de   : > { %v2542_v60 = vadd.f32 %v1297_v59, %v2404_v4  ;;  %v1839_v59 = vld [vmem:[%s2395_s12 + $0x18] sm:$0xff] }
 0x8df   : > { %1529 = vmatpush.bf16.msra.mxu2 %v1839_v59 }
 0x8e0   : > { %v1305_v54 = vsel %vm612_vm1, %v2542_v60, 0.0 }
 0x8e1   : > { %1306 = vadd.xlane.f32.xlu2 %v1305_v54 }
 0x94c   : > { %v1304_v61 = vpop.xlane.xlu0 %1303 }
 0x94d   : > { %v1308_v62 = vmul.f32 %v1304_v61, %v2408_v12 }
 0x94f   : > { %v1310_v2 = vsub.f32 %v2537_v57, %v1308_v62 }
 0x951   : > { %v1312_v0 = vmul.f32 %v1310_v2, %v1310_v2 }
 0x953   : > { %v1314_v1 = vsel %vm612_vm1, %v1312_v0, 0.0 }
 0x954   : > { %1315 = vadd.xlane.f32.xlu1 %v1314_v1  ;;  %v1307_v3 = vpop.xlane.xlu2 %1306 }
 0x955   : > { %v1309_v5 = vmul.f32 %v1307_v3, %v2408_v12 }
 0x957   : > { %v1311_v4 = vsub.f32 %v2542_v60, %v1309_v5  ;;  %v1838_v5 = vld [vmem:[%s2395_s12 + $0x10] sm:$0xff] }
 0x958   : > { %1530 = vmatpush.bf16.msra.mxu2 %v1838_v5 }
 0x959   : > { %v1313_v6 = vmul.f32 %v1311_v4, %v1311_v4 }
 0x95b   : > { %v1317_v7 = vsel %vm612_vm1, %v1313_v6, 0.0 }
 0x95c   : > { %1318 = vadd.xlane.f32.xlu0 %v1317_v7  ;;  %1531 = vmatpush.bf16.msra.mxu2 %v1837_v13 }
 0x9c7   : > { %v1316_v9 = vpop.xlane.xlu1 %1315 }
 0x9c8   : > { %v1320_v10 = vmul.f32 %v1316_v9, %v2408_v12 }
 0x9ca   : > { %v1322_v11 = vadd.f32 1e-05, %v1320_v10 }
 0x9cc   : > { %1980 = vrsqrt.f32 %v1322_v11  ;;  %vm1330_vm14 = vweird.f32 %v1322_v11 }
 0x9cf   : > { %v1319_v14 = vpop.xlane.xlu0 %1318 }
 0x9d0   : > { %v1321_v15 = vmul.f32 %v1319_v14, %v2408_v12  ;;  %v1938_v12 = vld [vmem:[%s2654_s23] ss:$0 sm:$0xff] }
 0x9d2   : > { %v1981_v16 = vpop.eup %1980  ;;  %v1323_v17 = vadd.f32 1e-05, %v1321_v15 }
 0x9d3   : > { %v1325_v18 = vmul.f32 %v1981_v16, %v1322_v11  ;;  %vm1331_vm13 = vweird.f32 %v1981_v16 }
 0x9d4   : > { %1982 = vrsqrt.f32 %v1323_v17  ;;  %vm1332_vm15 = vmor %vm1330_vm14, %vm1331_vm13  ;;  %vm1340_vm2 = vweird.f32 %v1323_v17 }
 0x9d5   : > { %v1326_v19 = vmul.f32 %v1981_v16, %v1325_v18 }
 0x9d7   : > { %v1327_v20 = vmul.f32 0.5, %v1326_v19  ;;  %v1836_v19 = vld [vmem:[%s2395_s12] sm:$0xff] }
 0x9d8   : > { %1532 = vmatpush.bf16.msra.mxu2 %v1836_v19 }
 0x9d9   : > { %v1328_v21 = vsub.f32 1.5, %v1327_v20 }
 0x9da   : > { %v1983_v22 = vpop.eup %1982 }
 0x9db   : > { %v1329_v23 = vmul.f32 %v1981_v16, %v1328_v21  ;;  %v1335_v24 = vmul.f32 %v1983_v22, %v1323_v17  ;;  %vm1341_vm0 = vweird.f32 %v1983_v22 }
 0x9dc   : > { %vm1342_vm3 = vmor %vm1340_vm2, %vm1341_vm0 }
 0x9dd   : > { %v1336_v25 = vmul.f32 %v1983_v22, %v1335_v24  ;;  %v1333_v26 = vsel %vm1332_vm15, %v1981_v16, %v1329_v23 }
 0x9de   : > { %v1344_v29 = vmul.f32 %v1333_v26, %v1310_v2 }
 0x9df   : > { %v1337_v27 = vmul.f32 0.5, %v1336_v25 }
 0x9e0   : > { %v1350_v33 = vmul.f32 %v1938_v12, %v1344_v29 }
 0x9e1   : > { %v1338_v28 = vsub.f32 1.5, %v1337_v27 }
 0x9e2   : > { %v1356_v36 = vadd.f32 %v1939_v32, %v1350_v33 }
 0x9e3   : > { %v1339_v30 = vmul.f32 %v1983_v22, %v1338_v28 }
 0x9e5   : > { %v1343_v31 = vsel %vm1342_vm3, %v1983_v22, %v1339_v30 }
 0x9e6   : > { %v1345_v34 = vmul.f32 %v1343_v31, %v1311_v4 }
 0x9e8   : > { %v1351_v35 = vmul.f32 %v1938_v12, %v1345_v34 }
 0x9ea   : > { %v1357_v37 = vadd.f32 %v1939_v32, %v1351_v35 }
 0x9ec   : > { %v1358_v38 = vpack.c.bf16 %v1357_v37, %v1356_v36 }
 0x9ee   : > { %1801 = vmatmul.msk.bf16.vlgmr.msrb.gmra.mxu0 %vm612_vm1, %v1358_v38 }
 0xa6b   : > { %v1391_v40 = vpop.f32.mrf.mxu0 }
 0xa6c   : > { %v2568_v63 = vadd.f32 %v1940_v39, %v1391_v40 }
 0xa6e   : > { %v2571_v41 = vmul.f32 0.70710677, %v2568_v63 }
 0xa70   : > { %v1400_v42 = vmul.f32 %v2571_v41, %v2571_v41 }
 0xa72   : > { %v1401_v43 = vmin.f32 %v1400_v42, 16.0 }
 0xa73   : > { %v1393_v44 = vpop.f32.mrf.mxu0 }
 0xa74   : > { %v1402_v45 = vmul.f32 2.1237322e-06, %v1401_v43  ;;  %v1413_v46 = vmul.f32 3.8918573e-05, %v1401_v43  ;;  %v2575_v47 = vadd.f32 %v1940_v39, %v1393_v44 }
 0xa76   : > { %v1403_v48 = vadd.f32 0.00028619796, %v1402_v45  ;;  %v1414_v49 = vadd.f32 0.001143296, %v1413_v46  ;;  %v2578_v50 = vmul.f32 0.70710677, %v2575_v47 }
 0xa78   : > { %v1415_v51 = vmul.f32 %v1414_v49, %v1401_v43  ;;  %v1440_v52 = vmul.f32 %v2578_v50, %v2578_v50  ;;  %v1404_v53 = vmul.f32 %v1403_v48, %v1401_v43 }
 0xa7a   : > { %v1416_v55 = vadd.f32 0.014752088, %v1415_v51  ;;  %v1441_v56 = vmin.f32 %v1440_v52, 16.0  ;;  %v1405_v62 = vadd.f32 0.0036580483, %v1404_v53 }
 0xa7c   : > { %v1417_v58 = vmul.f32 %v1416_v55, %v1401_v43  ;;  %v1442_v54 = vmul.f32 2.1237322e-06, %v1441_v56  ;;  %v1453_v61 = vmul.f32 3.8918573e-05, %v1441_v56  ;;  %v1406_v7 = vmul.f32 %v1405_v62, %v1401_v43 }
 0xa7e   : > { %v1418_v2 = vadd.f32 0.112945676, %v1417_v58  ;;  %v1443_v0 = vadd.f32 0.00028619796, %v1442_v54  ;;  %v1454_v1 = vadd.f32 0.001143296, %v1453_v61 }
 0xa7f   : > { %v1407_v15 = vadd.f32 0.05243302, %v1406_v7 }
 0xa80   : > { %v1419_v3 = vmul.f32 %v1418_v2, %v1401_v43  ;;  %v1444_v4 = vmul.f32 %v1443_v0, %v1441_v56  ;;  %v1455_v6 = vmul.f32 %v1454_v1, %v1441_v56  ;;  %v1396_v2 = vmul.f32 0.5, %v2568_v63 }
 0xa81   : > { %v1408_v21 = vmul.f32 %v1407_v15, %v1401_v43  ;;  %v1397_v0 = vmul.f32 0.5, %v2575_v47 }
 0xa82   : > { %v1420_v8 = vadd.f32 0.4994258, %v1419_v3  ;;  %v1445_v9 = vadd.f32 0.0036580483, %v1444_v4  ;;  %v1456_v10 = vadd.f32 0.014752088, %v1455_v6 }
 0xa83   : > { %v1409_v26 = vadd.f32 0.18741608, %v1408_v21  ;;  %v1941_v6 = vld [vmem:[%s2397_s8] ss:$0 sm:$0xff] }
 0xa84   : > { %v1421_v11 = vmul.f32 %v1420_v8, %v1401_v43  ;;  %v1457_v14 = vmul.f32 %v1456_v10, %v1441_v56  ;;  %v1446_v17 = vmul.f32 %v1445_v9, %v1441_v56 }
 0xa85   : > { %v1410_v30 = vmul.f32 %v1409_v26, %v1401_v43 }
 0xa86   : > { %v1422_v16 = vadd.f32 1.0, %v1421_v11  ;;  %v1458_v18 = vadd.f32 0.112945676, %v1457_v14  ;;  %v1447_v22 = vadd.f32 0.05243302, %v1446_v17 }
 0xa87   : > { %v1411_v36 = vadd.f32 1.1283791, %v1410_v30 }
 0xa88   : > { %1984 = vrcp.f32 %v1422_v16  ;;  %v1459_v20 = vmul.f32 %v1458_v18, %v1441_v56  ;;  %v1448_v28 = vmul.f32 %v1447_v22, %v1441_v56  ;;  %v1434_v32 = vand.u32 2147483648, %v1422_v16 }
 0xa89   : > { %v1432_v34 = vand.u32 2147483647, %v1422_v16  ;;  %vm1428_vm5 = vweird.f32 %v1422_v16  ;;  %v1412_v45 = vmul.f32 %v1411_v36, %v2571_v41 }
 0xa8a   : > { %v1460_v23 = vadd.f32 0.4994258, %v1459_v20  ;;  %v1449_v33 = vadd.f32 0.18741608, %v1448_v28  ;;  %v1435_v39 = vor.u32 1.1754944e-38, %v1434_v32 }
 0xa8b   : > { %vm1433_vm7 = vcmp.eq.f32.partialorder %v1432_v34, 8.507059e+37 }
 0xa8c   : > { %v1461_v24 = vmul.f32 %v1460_v23, %v1441_v56  ;;  %v1450_v40 = vmul.f32 %v1449_v33, %v1441_v56 }
 0xa8e   : > { %v1985_v25 = vpop.eup %1984  ;;  %v1462_v12 = vadd.f32 1.0, %v1461_v24  ;;  %v1451_v43 = vadd.f32 1.1283791, %v1450_v40 }
 0xa8f   : > { %v1424_v27 = vmul.f32 %v1985_v25, %v1422_v16  ;;  %vm1429_vm4 = vweird.f32 %v1985_v25 }
 0xa90   : > { %1986 = vrcp.f32 %v1462_v12  ;;  %vm1430_vm6 = vmor %vm1428_vm5, %vm1429_vm4  ;;  %v1474_v48 = vand.u32 2147483648, %v1462_v12  ;;  %v1472_v52 = vand.u32 2147483647, %v1462_v12  ;;  %vm1468_vm9 = vweird.f32 %v1462_v12 }
 0xa91   : > { %v1425_v29 = vsub.f32 1.0, %v1424_v27  ;;  %v1452_v56 = vmul.f32 %v1451_v43, %v2578_v50 }
 0xa92   : > { %v1475_v55 = vor.u32 1.1754944e-38, %v1474_v48  ;;  %vm1473_vm11 = vcmp.eq.f32.partialorder %v1472_v52, 8.507059e+37 }
 0xa93   : > { %v1426_v31 = vmul.f32 %v1985_v25, %v1425_v29 }
 0xa95   : > { %v1427_v35 = vadd.f32 %v1985_v25, %v1426_v31 }
 0xa96   : > { %v1987_v37 = vpop.eup %1986 }
 0xa97   : > { %v1431_v38 = vsel %vm1430_vm6, %v1985_v25, %v1427_v35  ;;  %v1464_v42 = vmul.f32 %v1987_v37, %v1462_v12  ;;  %vm1469_vm8 = vweird.f32 %v1987_v37 }
 0xa98   : > { %v1436_v44 = vsel %vm1433_vm7, %v1435_v39, %v1431_v38  ;;  %vm1470_vm10 = vmor %vm1468_vm9, %vm1469_vm8 }
 0xa99   : > { %v1465_v46 = vsub.f32 1.0, %v1464_v42  ;;  %v1437_v49 = vmul.f32 %v1436_v44, %v1412_v45 }
 0xa9b   : > { %v1466_v51 = vmul.f32 %v1987_v37, %v1465_v46  ;;  %v1802_v58 = vclamps-f32 %v1437_v49, 1.0 }
 0xa9d   : > { %v1467_v53 = vadd.f32 %v1987_v37, %v1466_v51  ;;  %v1480_v41 = vadd.f32 1.0, %v1802_v58 }
 0xa9f   : > { %v1471_v59 = vsel %vm1470_vm10, %v1987_v37, %v1467_v53  ;;  %v1482_v3 = vmul.f32 %v1480_v41, %v1396_v2 }
 0xaa0   : > { %v1476_v54 = vsel %vm1473_vm11, %v1475_v55, %v1471_v59 }
 0xaa1   : > { %v1477_v61 = vmul.f32 %v1476_v54, %v1452_v56 }
 0xaa3   : > { %v1803_v62 = vclamps-f32 %v1477_v61, 1.0 }
 0xaa5   : > { %v1481_v1 = vadd.f32 1.0, %v1803_v62 }
 0xaa7   : > { %v1483_v5 = vmul.f32 %v1481_v1, %v1397_v0 }
 0xaa9   : > { %v1484_v4 = vpack.c.bf16 %v1483_v5, %v1482_v3 }
 0xaab   : > { %1820 = vmatmul.msk.bf16.vlgmr.msra.gmra.mxu2 %vm1521_vm12, %v1484_v4 }
 0xb2e   : > { %v1534_v7 = vpop.f32.mrf.mxu2 }
 0xb2f   : > { %v1535_v8 = vadd.f32 %v1941_v6, %v1534_v7 }
 0xb31   : > { %v1539_v50 = vadd.f32 %v1535_v8, %v2537_v57 }
 0xb33   : > { %1541 = vst.msk [vmem:[#allocation2] sm:$0xff] %vm612_vm1, %v1539_v50 }
 0xb36   : > { %v1536_v9 = vpop.f32.mrf.mxu2 }
 0xb37   : > { %v1537_v10 = vadd.f32 %v1941_v6, %v1536_v9  ;;  %1546 = sbr.rel (%p1821_p3) target bundleno = 2884 (0xb44), region = 84 }
 0xb39   : > { %v1540_v11 = vadd.f32 %v1537_v10, %v2542_v60 }
 0xb3b   : > { %1542 = vst.msk [vmem:[#allocation2 + $0x8] sm:$0xff] %vm612_vm1, %v1540_v11 }
 0xb3c   : > { %v1547_v63 = vld [vmem:[#allocation2] sm:$0xff] }
 0xb3d   : > { %1549 = vst.msk [vmem:[#allocation10] sm:$0xff] %vm612_vm1, %v1547_v63 }
 0xb42   : > { %v1548_v47 = vld [vmem:[#allocation2 + $0x8] sm:$0xff] }
 0xb43   : > { %1550 = vst.msk [vmem:[#allocation10 + $0x8] sm:$0xff] %vm612_vm1, %v1548_v47 }
 0xb44 PF: > { %p1866_p4 = scmp.eq.s32.totalorder %s2308_s26, 1  ;;  %s1561_s24 = sshll.u32 %s2632_s11, 4  ;;  %s1562_s24 = int_to_ptr.hbm [resolvable:$true] %s1561_s24 }
 0xb45   : > { %s2184_s12 = smov [#allocation10]   ;;  %s2185_s16 = smov 128  }
 0xb46   : > { %s1559_s8 = sshll.u32 %s2184_s12, 4  ;;  %s1560_s8 = int_to_ptr.vmem [resolvable:$true] %s1559_s8 }
 0xb47   : > { %1849 = dma.vmem_to_hbm [thread:$0]  (%p1866_p4), %s1560_s8, 256, %s1562_s24, [#allocation6], %s2185_s16, %s2185_s16, %s2181_s30  }
 0xb48   : > { %2139 = dma.done.wait (%p1866_p4), [#allocation6], 256  }
 0xb49   : > { %2141 = vsyncadd (%p1866_p4), [#allocation6], 4294967040 }
 0xb4a PF: > { %s26_s22 = sadd.s32 1, %s2164_s22   ;;  %s2655_s17 = sld [smem:[#allocation14_spill]] }
 0xb4b   : > { %p23_p5 = scmp.ge.s32.totalorder %s26_s22, 4   ;;  %s2656_s18 = sld [smem:[#allocation15_spill]] }
 0xb4c   : > { %s2657_s19 = sld [smem:[#allocation18_spill]] }
 0xb4d   : > { %s2658_s20 = sld [smem:[#allocation16_spill]]  ;;  %25 = sbr.rel (!%p23_p5) target bundleno = 10 (0xa), region = 151 }
 0xb4e   : > { %s2659_s21 = sld [smem:[#allocation17_spill]] }
 0xb52   :  { %1578 = vsyncpa [#allocation5], 1 }
 0xb53   :  { %1580 = vsyncpa [#allocation5 + $0x1], 1 }
 0xb54   :  { %1581 = vsyncpa [#allocation8], 1 }
 0xb55   :  { %1583 = vsyncpa [#allocation8 + $0x1], 1 }
 0xb56   :  { %1584 = vsyncpa [#allocation6], 1 }
 0xb57   :  { %1586 = vsyncpa [#allocation6 + $0x1], 1 }

</bundles_post_ra>
